<compile_context>
chip_gen: v6e
topology: v6e:2x2x1
jax: 0.10.0
libtpu: 0.0.40
codegen_flags: <defaults>
</compile_context>

<pallas_src>
import jax
import jax.numpy as jnp
from jax import lax
from jax.experimental import pallas as pl
from jax.experimental.pallas import tpu as pltpu


def lstm_fc_kernel(emb_ref, w_ih_ref, w_hh_ref, b_ref, w_fc_ref, b_fc_ref,
                   out_ref, gates_ref, h_ref, c_ref):
    """Full LSTM recurrence over T steps + final Linear layer.

    emb_ref  : [T*Bp, E]  bf16/f32  time-major embedded tokens (flattened)
    w_ih_ref : [E, 4H]    bf16/f32  transposed weight_ih (gate order i,f,g,o)
    w_hh_ref : [H, 4H]    bf16/f32  transposed weight_hh
    b_ref    : [1, 4H]    f32       bias_ih + bias_hh
    w_fc_ref : [H, Op]    bf16/f32  transposed fc weight (O padded to 128)
    b_fc_ref : [1, Op]    f32       fc bias (padded)
    out_ref  : [Bp, Op]   f32       logits (padded)
    gates_ref: [T*Bp, 4H] f32       VMEM scratch: precomputed input projection
    h_ref    : [Bp, H]    f32       VMEM scratch: hidden state
    c_ref    : [Bp, H]    f32       VMEM scratch: cell state
    """
    TB, _ = emb_ref.shape
    Bp, H = h_ref.shape
    T = TB // Bp

    # --- (1) Input projection for ALL timesteps in a single MXU matmul. ---
    gates_ref[...] = (
        jnp.dot(emb_ref[...], w_ih_ref[...], preferred_element_type=jnp.float32)
        + b_ref[...]
    )

    h_ref[...] = jnp.zeros_like(h_ref)
    c_ref[...] = jnp.zeros_like(c_ref)

    # --- (2) Serial recurrence: only the hidden-state matmul is on the
    #         critical path now.  Fully unrolled (T is static and small). ---
    def step(t, carry):
        h = h_ref[...]
        c = c_ref[...]
        row = pl.multiple_of(t * Bp, 8)          # sublane-aligned slice start
        g_in = gates_ref[pl.ds(row, Bp), :]      # (Bp, 4H) precomputed
        gates = g_in + jnp.dot(
            h.astype(w_hh_ref.dtype), w_hh_ref[...],
            preferred_element_type=jnp.float32)
        # Gate order matches torch.nn.LSTM: i, f, g, o (128-aligned slices).
        i_g = jax.nn.sigmoid(gates[:, 0:H])
        f_g = jax.nn.sigmoid(gates[:, H:2 * H])
        g_g = jnp.tanh(gates[:, 2 * H:3 * H])
        o_g = jax.nn.sigmoid(gates[:, 3 * H:4 * H])
        c_new = f_g * c + i_g * g_g
        h_ref[...] = o_g * jnp.tanh(c_new)
        c_ref[...] = c_new
        return carry

    lax.fori_loop(0, T, step, 0, unroll=True)

    # --- (3) Final Linear on the last hidden state (lane-dense output). ---
    out_ref[...] = (
        jnp.dot(h_ref[...].astype(w_fc_ref.dtype), w_fc_ref[...],
                preferred_element_type=jnp.float32)
        + b_fc_ref[...]
    )


def simple_lstm_forward(x_tokens, params, compute_dtype=jnp.bfloat16):
    """x_tokens: [B, T] int32.  Returns logits [B, output_dim] float32."""
    emb_table = params["embedding"]        # [V, E], row 0 zeros (padding_idx=0)
    w_ih_t = params["w_ih_t"]              # [E, 4H]
    w_hh_t = params["w_hh_t"]              # [H, 4H]
    b = params["b"]                        # [1, 4H]  f32
    w_fc_t = params["w_fc_t"]              # [H, O]
    b_fc = params["b_fc"]                  # [1, O]   f32

    B, T = x_tokens.shape
    E = emb_table.shape[1]
    H = w_hh_t.shape[0]
    O = w_fc_t.shape[1]

    # Pad batch to a sublane multiple (8); extra rows use padding token 0.
    Bp = ((B + 7) // 8) * 8
    if Bp != B:
        x_tokens = jnp.pad(x_tokens, ((0, Bp - B), (0, 0)))

    # Pad output dim to a full lane (128) -> unmasked lane-dense store.
    Op = ((O + 127) // 128) * 128
    if Op != O:
        w_fc_t = jnp.pad(w_fc_t, ((0, 0), (0, Op - O)))
        b_fc = jnp.pad(b_fc, ((0, 0), (0, Op - O)))

    # Glue: embedding gather + time-major flatten (stays in plain JAX).
    embedded = jnp.take(emb_table, x_tokens, axis=0)          # [Bp, T, E]
    embedded = jnp.transpose(embedded, (1, 0, 2))             # [T, Bp, E]
    embedded = embedded.reshape(T * Bp, E).astype(compute_dtype)

    w_ih_c = w_ih_t.astype(compute_dtype)
    w_hh_c = w_hh_t.astype(compute_dtype)
    w_fc_c = w_fc_t.astype(compute_dtype)

    vmem = pltpu.MemorySpace.VMEM
    full = lambda: pl.BlockSpec(memory_space=vmem)  # whole array resident

    # TODO(synk): if shapes scale up (long T / big B), tile the time axis with
    # a grid + BlockSpec (v7x has 64 MiB VMEM) and split B across TensorCores.
    out = pl.pallas_call(
        lstm_fc_kernel,
        out_shape=jax.ShapeDtypeStruct((Bp, Op), jnp.float32),
        in_specs=[full(), full(), full(), full(), full(), full()],
        out_specs=pl.BlockSpec(memory_space=vmem),
        scratch_shapes=[
            pltpu.VMEM((T * Bp, 4 * H), jnp.float32),   # precomputed input proj
            pltpu.VMEM((Bp, H), jnp.float32),           # h
            pltpu.VMEM((Bp, H), jnp.float32),           # c
        ],
    )(embedded, w_ih_c, w_hh_c, b, w_fc_c, b_fc)

    return out[:B, :O]


def reference_forward(x_tokens, params, compute_dtype=jnp.bfloat16):
    """Pure-JAX reference mirroring torch.nn.LSTM semantics (gate order i,f,g,o),
    using the same bf16-operand / f32-accumulation recipe as the kernel."""
    emb = jnp.take(params["embedding"], x_tokens, axis=0).astype(compute_dtype)
    w_ih = params["w_ih_t"].astype(compute_dtype)
    w_hh = params["w_hh_t"].astype(compute_dtype)
    w_fc = params["w_fc_t"].astype(compute_dtype)
    H = params["w_hh_t"].shape[0]
    B = x_tokens.shape[0]

    def step(carry, x_t):
        h, c = carry
        gates = (
            jnp.dot(x_t, w_ih, preferred_element_type=jnp.float32)
            + params["b"]
            + jnp.dot(h.astype(compute_dtype), w_hh,
                      preferred_element_type=jnp.float32)
        )
        i_g = jax.nn.sigmoid(gates[:, 0:H])
        f_g = jax.nn.sigmoid(gates[:, H:2 * H])
        g_g = jnp.tanh(gates[:, 2 * H:3 * H])
        o_g = jax.nn.sigmoid(gates[:, 3 * H:4 * H])
        c = f_g * c + i_g * g_g
        h = o_g * jnp.tanh(c)
        return (h, c), None

    h0 = jnp.zeros((B, H), jnp.float32)
    (h, _), _ = lax.scan(step, (h0, h0), jnp.transpose(emb, (1, 0, 2)))
    return (jnp.dot(h.astype(compute_dtype), w_fc,
                    preferred_element_type=jnp.float32) + params["b_fc"])


def init_params(key, vocab_size, embed_dim, hidden_dim, output_dim):
    ks = jax.random.split(key, 7)
    scale = 0.1
    embedding = scale * jax.random.normal(ks[0], (vocab_size, embed_dim), jnp.float32)
    embedding = embedding.at[0].set(0.0)  # padding_idx=0
    w_ih = scale * jax.random.normal(ks[1], (4 * hidden_dim, embed_dim), jnp.float32)
    w_hh = scale * jax.random.normal(ks[2], (4 * hidden_dim, hidden_dim), jnp.float32)
    b_ih = scale * jax.random.normal(ks[3], (4 * hidden_dim,), jnp.float32)
    b_hh = scale * jax.random.normal(ks[4], (4 * hidden_dim,), jnp.float32)
    w_fc = scale * jax.random.normal(ks[5], (output_dim, hidden_dim), jnp.float32)
    b_fc = scale * jax.random.normal(ks[6], (output_dim,), jnp.float32)
    return {
        "embedding": embedding,
        "w_ih_t": w_ih.T,                               # [E, 4H]
        "w_hh_t": w_hh.T,                               # [H, 4H]
        "b": (b_ih + b_hh).reshape(1, 4 * hidden_dim),  # [1, 4H]
        "w_fc_t": w_fc.T,                               # [H, O]
        "b_fc": b_fc.reshape(1, output_dim),            # [1, O]
    }


if __name__ == "__main__":
    # Small shapes consistent with the module: embed_dim=64, hidden_dim=128,
    # output_dim = #intent tags (8), short sequence, batch=2.
    vocab_size = 30
    embed_dim = 64
    hidden_dim = 128
    output_dim = 8
    batch = 2
    seq_len = 8

    key = jax.random.PRNGKey(0)
    k_param, k_tok = jax.random.split(key)
    params = init_params(k_param, vocab_size, embed_dim, hidden_dim, output_dim)

    x = jax.random.randint(k_tok, (batch, seq_len), 0, vocab_size, dtype=jnp.int32)

    forward = jax.jit(simple_lstm_forward)
    logits = forward(x, params)
    logits = jax.block_until_ready(logits)

    ref = reference_forward(x, params)
    assert logits.shape == (batch, output_dim)
    assert jnp.allclose(logits, ref, atol=1e-3, rtol=1e-3), "mismatch vs reference"

    print("KERNEL_OK")
</pallas_src>

<mosaic_0001>
module attributes {stable_mosaic.version = 11 : i64} {
  func.func @lstm_fc_kernel(%arg0: memref<64x64xbf16, #tpu.memory_space<vmem>>, %arg1: memref<64x512xbf16, #tpu.memory_space<vmem>>, %arg2: memref<128x512xbf16, #tpu.memory_space<vmem>>, %arg3: memref<1x512xf32, #tpu.memory_space<vmem>>, %arg4: memref<128x128xbf16, #tpu.memory_space<vmem>>, %arg5: memref<1x128xf32, #tpu.memory_space<vmem>>, %arg6: memref<8x128xf32, #tpu.memory_space<vmem>>, %arg7: memref<64x512xf32, #tpu.memory_space<vmem>>, %arg8: memref<8x128xf32, #tpu.memory_space<vmem>>, %arg9: memref<8x128xf32, #tpu.memory_space<vmem>>) attributes {dimension_semantics = [], scalar_prefetch = 0 : i64, scratch_operands = 3 : i64, tpu.core_type = #tpu.core_type<tc>} {
    %c0 = arith.constant 0 : index
    %c0_0 = arith.constant 0 : index
    %0 = vector.load %arg0[%c0, %c0_0] : memref<64x64xbf16, #tpu.memory_space<vmem>>, vector<64x64xbf16>
    %c0_1 = arith.constant 0 : index
    %c0_2 = arith.constant 0 : index
    %1 = vector.load %arg1[%c0_1, %c0_2] : memref<64x512xbf16, #tpu.memory_space<vmem>>, vector<64x512xbf16>
    %cst = arith.constant dense<0.000000e+00> : vector<64x512xf32>
    %2 = tpu.matmul %0, %1, %cst {dimension_numbers = #tpu.dot_dimension_numbers<[1], [0], [0], [1], [0, 0, 1, 1], [], []>} : vector<64x64xbf16>, vector<64x512xbf16>, vector<64x512xf32> -> vector<64x512xf32>
    %c0_3 = arith.constant 0 : index
    %c0_4 = arith.constant 0 : index
    %3 = vector.load %arg3[%c0_3, %c0_4] : memref<1x512xf32, #tpu.memory_space<vmem>>, vector<1x512xf32>
    %4 = vector.broadcast %3 : vector<1x512xf32> to vector<64x512xf32>
    %5 = arith.addf %2, %4 : vector<64x512xf32>
    %c0_5 = arith.constant 0 : index
    %c0_6 = arith.constant 0 : index
    %6 = vector.load %arg7[%c0_5, %c0_6] : memref<64x512xf32, #tpu.memory_space<vmem>>, vector<64x512xf32>
    tpu.vector_store %arg7[%c0_5, %c0_6], %5 {strides = array<i32>} : memref<64x512xf32, #tpu.memory_space<vmem>>, vector<64x512xf32>,
    %cst_7 = arith.constant 0.000000e+00 : f32
    %7 = vector.broadcast %cst_7 : f32 to vector<8x128xf32>
    %c0_8 = arith.constant 0 : index
    %c0_9 = arith.constant 0 : index
    %8 = vector.load %arg8[%c0_8, %c0_9] : memref<8x128xf32, #tpu.memory_space<vmem>>, vector<8x128xf32>
    tpu.vector_store %arg8[%c0_8, %c0_9], %7 {strides = array<i32>} : memref<8x128xf32, #tpu.memory_space<vmem>>, vector<8x128xf32>,
    %cst_10 = arith.constant 0.000000e+00 : f32
    %9 = vector.broadcast %cst_10 : f32 to vector<8x128xf32>
    %c0_11 = arith.constant 0 : index
    %c0_12 = arith.constant 0 : index
    %10 = vector.load %arg9[%c0_11, %c0_12] : memref<8x128xf32, #tpu.memory_space<vmem>>, vector<8x128xf32>
    tpu.vector_store %arg9[%c0_11, %c0_12], %9 {strides = array<i32>} : memref<8x128xf32, #tpu.memory_space<vmem>>, vector<8x128xf32>,
    %c0_i32 = arith.constant 0 : i32
    %c0_13 = arith.constant 0 : index
    %c0_14 = arith.constant 0 : index
    %11 = vector.load %arg8[%c0_13, %c0_14] : memref<8x128xf32, #tpu.memory_space<vmem>>, vector<8x128xf32>
    %c0_15 = arith.constant 0 : index
    %c0_16 = arith.constant 0 : index
    %12 = vector.load %arg9[%c0_15, %c0_16] : memref<8x128xf32, #tpu.memory_space<vmem>>, vector<8x128xf32>
    %c8_i32 = arith.constant 8 : i32
    %13 = arith.muli %c0_i32, %c8_i32 : i32
    %14 = tpu.assume_multiple %13, 8 : i32
    %15 = arith.index_cast %14 : i32 to index
    %c0_17 = arith.constant 0 : index
    %16 = vector.load %arg7[%15, %c0_17] : memref<64x512xf32, #tpu.memory_space<vmem>>, vector<8x512xf32>
    %17 = arith.truncf %11 : vector<8x128xf32> to vector<8x128xbf16>
    %c0_18 = arith.constant 0 : index
    %c0_19 = arith.constant 0 : index
    %18 = vector.load %arg2[%c0_18, %c0_19] : memref<128x512xbf16, #tpu.memory_space<vmem>>, vector<128x512xbf16>
    %cst_20 = arith.constant dense<0.000000e+00> : vector<8x512xf32>
    %19 = tpu.matmul %17, %18, %cst_20 {dimension_numbers = #tpu.dot_dimension_numbers<[1], [0], [0], [1], [0, 0, 1, 1], [], []>} : vector<8x128xbf16>, vector<128x512xbf16>, vector<8x512xf32> -> vector<8x512xf32>
    %20 = arith.addf %16, %19 : vector<8x512xf32>
    %21 = vector.extract_strided_slice %20 {offsets = [0, 0], sizes = [8, 128], strides = [1, 1]} : vector<8x512xf32> to vector<8x128xf32>
    %22 = arith.negf %21 : vector<8x128xf32>
    %23 = math.exp %22 : vector<8x128xf32>
    %cst_21 = arith.constant 1.000000e+00 : f32
    %24 = vector.broadcast %cst_21 : f32 to vector<8x128xf32>
    %25 = arith.addf %24, %23 : vector<8x128xf32>
    %26 = arith.divf %24, %25 : vector<8x128xf32>
    %27 = vector.extract_strided_slice %20 {offsets = [0, 128], sizes = [8, 128], strides = [1, 1]} : vector<8x512xf32> to vector<8x128xf32>
    %28 = arith.negf %27 : vector<8x128xf32>
    %29 = math.exp %28 : vector<8x128xf32>
    %cst_22 = arith.constant 1.000000e+00 : f32
    %30 = vector.broadcast %cst_22 : f32 to vector<8x128xf32>
    %31 = arith.addf %30, %29 : vector<8x128xf32>
    %32 = arith.divf %30, %31 : vector<8x128xf32>
    %33 = vector.extract_strided_slice %20 {offsets = [0, 256], sizes = [8, 128], strides = [1, 1]} : vector<8x512xf32> to vector<8x128xf32>
    %34 = math.tanh %33 : vector<8x128xf32>
    %35 = vector.extract_strided_slice %20 {offsets = [0, 384], sizes = [8, 128], strides = [1, 1]} : vector<8x512xf32> to vector<8x128xf32>
    %36 = arith.negf %35 : vector<8x128xf32>
    %37 = math.exp %36 : vector<8x128xf32>
    %cst_23 = arith.constant 1.000000e+00 : f32
    %38 = vector.broadcast %cst_23 : f32 to vector<8x128xf32>
    %39 = arith.addf %38, %37 : vector<8x128xf32>
    %40 = arith.divf %38, %39 : vector<8x128xf32>
    %41 = arith.mulf %32, %12 : vector<8x128xf32>
    %42 = arith.mulf %26, %34 : vector<8x128xf32>
    %43 = arith.addf %41, %42 : vector<8x128xf32>
    %44 = math.tanh %43 : vector<8x128xf32>
    %45 = arith.mulf %40, %44 : vector<8x128xf32>
    %c0_24 = arith.constant 0 : index
    %c0_25 = arith.constant 0 : index
    %46 = vector.load %arg8[%c0_24, %c0_25] : memref<8x128xf32, #tpu.memory_space<vmem>>, vector<8x128xf32>
    tpu.vector_store %arg8[%c0_24, %c0_25], %45 {strides = array<i32>} : memref<8x128xf32, #tpu.memory_space<vmem>>, vector<8x128xf32>,
    %c0_26 = arith.constant 0 : index
    %c0_27 = arith.constant 0 : index
    %47 = vector.load %arg9[%c0_26, %c0_27] : memref<8x128xf32, #tpu.memory_space<vmem>>, vector<8x128xf32>
    tpu.vector_store %arg9[%c0_26, %c0_27], %43 {strides = array<i32>} : memref<8x128xf32, #tpu.memory_space<vmem>>, vector<8x128xf32>,
    %c1_i32 = arith.constant 1 : i32
    %c0_28 = arith.constant 0 : index
    %c0_29 = arith.constant 0 : index
    %48 = vector.load %arg8[%c0_28, %c0_29] : memref<8x128xf32, #tpu.memory_space<vmem>>, vector<8x128xf32>
    %c0_30 = arith.constant 0 : index
    %c0_31 = arith.constant 0 : index
    %49 = vector.load %arg9[%c0_30, %c0_31] : memref<8x128xf32, #tpu.memory_space<vmem>>, vector<8x128xf32>
    %c8_i32_32 = arith.constant 8 : i32
    %50 = arith.muli %c1_i32, %c8_i32_32 : i32
    %51 = tpu.assume_multiple %50, 8 : i32
    %52 = arith.index_cast %51 : i32 to index
    %c0_33 = arith.constant 0 : index
    %53 = vector.load %arg7[%52, %c0_33] : memref<64x512xf32, #tpu.memory_space<vmem>>, vector<8x512xf32>
    %54 = arith.truncf %48 : vector<8x128xf32> to vector<8x128xbf16>
    %c0_34 = arith.constant 0 : index
    %c0_35 = arith.constant 0 : index
    %55 = vector.load %arg2[%c0_34, %c0_35] : memref<128x512xbf16, #tpu.memory_space<vmem>>, vector<128x512xbf16>
    %cst_36 = arith.constant dense<0.000000e+00> : vector<8x512xf32>
    %56 = tpu.matmul %54, %55, %cst_36 {dimension_numbers = #tpu.dot_dimension_numbers<[1], [0], [0], [1], [0, 0, 1, 1], [], []>} : vector<8x128xbf16>, vector<128x512xbf16>, vector<8x512xf32> -> vector<8x512xf32>
    %57 = arith.addf %53, %56 : vector<8x512xf32>
    %58 = vector.extract_strided_slice %57 {offsets = [0, 0], sizes = [8, 128], strides = [1, 1]} : vector<8x512xf32> to vector<8x128xf32>
    %59 = arith.negf %58 : vector<8x128xf32>
    %60 = math.exp %59 : vector<8x128xf32>
    %cst_37 = arith.constant 1.000000e+00 : f32
    %61 = vector.broadcast %cst_37 : f32 to vector<8x128xf32>
    %62 = arith.addf %61, %60 : vector<8x128xf32>
    %63 = arith.divf %61, %62 : vector<8x128xf32>
    %64 = vector.extract_strided_slice %57 {offsets = [0, 128], sizes = [8, 128], strides = [1, 1]} : vector<8x512xf32> to vector<8x128xf32>
    %65 = arith.negf %64 : vector<8x128xf32>
    %66 = math.exp %65 : vector<8x128xf32>
    %cst_38 = arith.constant 1.000000e+00 : f32
    %67 = vector.broadcast %cst_38 : f32 to vector<8x128xf32>
    %68 = arith.addf %67, %66 : vector<8x128xf32>
    %69 = arith.divf %67, %68 : vector<8x128xf32>
    %70 = vector.extract_strided_slice %57 {offsets = [0, 256], sizes = [8, 128], strides = [1, 1]} : vector<8x512xf32> to vector<8x128xf32>
    %71 = math.tanh %70 : vector<8x128xf32>
    %72 = vector.extract_strided_slice %57 {offsets = [0, 384], sizes = [8, 128], strides = [1, 1]} : vector<8x512xf32> to vector<8x128xf32>
    %73 = arith.negf %72 : vector<8x128xf32>
    %74 = math.exp %73 : vector<8x128xf32>
    %cst_39 = arith.constant 1.000000e+00 : f32
    %75 = vector.broadcast %cst_39 : f32 to vector<8x128xf32>
    %76 = arith.addf %75, %74 : vector<8x128xf32>
    %77 = arith.divf %75, %76 : vector<8x128xf32>
    %78 = arith.mulf %69, %49 : vector<8x128xf32>
    %79 = arith.mulf %63, %71 : vector<8x128xf32>
    %80 = arith.addf %78, %79 : vector<8x128xf32>
    %81 = math.tanh %80 : vector<8x128xf32>
    %82 = arith.mulf %77, %81 : vector<8x128xf32>
    %c0_40 = arith.constant 0 : index
    %c0_41 = arith.constant 0 : index
    %83 = vector.load %arg8[%c0_40, %c0_41] : memref<8x128xf32, #tpu.memory_space<vmem>>, vector<8x128xf32>
    tpu.vector_store %arg8[%c0_40, %c0_41], %82 {strides = array<i32>} : memref<8x128xf32, #tpu.memory_space<vmem>>, vector<8x128xf32>,
    %c0_42 = arith.constant 0 : index
    %c0_43 = arith.constant 0 : index
    %84 = vector.load %arg9[%c0_42, %c0_43] : memref<8x128xf32, #tpu.memory_space<vmem>>, vector<8x128xf32>
    tpu.vector_store %arg9[%c0_42, %c0_43], %80 {strides = array<i32>} : memref<8x128xf32, #tpu.memory_space<vmem>>, vector<8x128xf32>,
    %c2_i32 = arith.constant 2 : i32
    %c0_44 = arith.constant 0 : index
    %c0_45 = arith.constant 0 : index
    %85 = vector.load %arg8[%c0_44, %c0_45] : memref<8x128xf32, #tpu.memory_space<vmem>>, vector<8x128xf32>
    %c0_46 = arith.constant 0 : index
    %c0_47 = arith.constant 0 : index
    %86 = vector.load %arg9[%c0_46, %c0_47] : memref<8x128xf32, #tpu.memory_space<vmem>>, vector<8x128xf32>
    %c8_i32_48 = arith.constant 8 : i32
    %87 = arith.muli %c2_i32, %c8_i32_48 : i32
    %88 = tpu.assume_multiple %87, 8 : i32
    %89 = arith.index_cast %88 : i32 to index
    %c0_49 = arith.constant 0 : index
    %90 = vector.load %arg7[%89, %c0_49] : memref<64x512xf32, #tpu.memory_space<vmem>>, vector<8x512xf32>
    %91 = arith.truncf %85 : vector<8x128xf32> to vector<8x128xbf16>
    %c0_50 = arith.constant 0 : index
    %c0_51 = arith.constant 0 : index
    %92 = vector.load %arg2[%c0_50, %c0_51] : memref<128x512xbf16, #tpu.memory_space<vmem>>, vector<128x512xbf16>
    %cst_52 = arith.constant dense<0.000000e+00> : vector<8x512xf32>
    %93 = tpu.matmul %91, %92, %cst_52 {dimension_numbers = #tpu.dot_dimension_numbers<[1], [0], [0], [1], [0, 0, 1, 1], [], []>} : vector<8x128xbf16>, vector<128x512xbf16>, vector<8x512xf32> -> vector<8x512xf32>
    %94 = arith.addf %90, %93 : vector<8x512xf32>
    %95 = vector.extract_strided_slice %94 {offsets = [0, 0], sizes = [8, 128], strides = [1, 1]} : vector<8x512xf32> to vector<8x128xf32>
    %96 = arith.negf %95 : vector<8x128xf32>
    %97 = math.exp %96 : vector<8x128xf32>
    %cst_53 = arith.constant 1.000000e+00 : f32
    %98 = vector.broadcast %cst_53 : f32 to vector<8x128xf32>
    %99 = arith.addf %98, %97 : vector<8x128xf32>
    %100 = arith.divf %98, %99 : vector<8x128xf32>
    %101 = vector.extract_strided_slice %94 {offsets = [0, 128], sizes = [8, 128], strides = [1, 1]} : vector<8x512xf32> to vector<8x128xf32>
    %102 = arith.negf %101 : vector<8x128xf32>
    %103 = math.exp %102 : vector<8x128xf32>
    %cst_54 = arith.constant 1.000000e+00 : f32
    %104 = vector.broadcast %cst_54 : f32 to vector<8x128xf32>
    %105 = arith.addf %104, %103 : vector<8x128xf32>
    %106 = arith.divf %104, %105 : vector<8x128xf32>
    %107 = vector.extract_strided_slice %94 {offsets = [0, 256], sizes = [8, 128], strides = [1, 1]} : vector<8x512xf32> to vector<8x128xf32>
    %108 = math.tanh %107 : vector<8x128xf32>
    %109 = vector.extract_strided_slice %94 {offsets = [0, 384], sizes = [8, 128], strides = [1, 1]} : vector<8x512xf32> to vector<8x128xf32>
    %110 = arith.negf %109 : vector<8x128xf32>
    %111 = math.exp %110 : vector<8x128xf32>
    %cst_55 = arith.constant 1.000000e+00 : f32
    %112 = vector.broadcast %cst_55 : f32 to vector<8x128xf32>
    %113 = arith.addf %112, %111 : vector<8x128xf32>
    %114 = arith.divf %112, %113 : vector<8x128xf32>
    %115 = arith.mulf %106, %86 : vector<8x128xf32>
    %116 = arith.mulf %100, %108 : vector<8x128xf32>
    %117 = arith.addf %115, %116 : vector<8x128xf32>
    %118 = math.tanh %117 : vector<8x128xf32>
    %119 = arith.mulf %114, %118 : vector<8x128xf32>
    %c0_56 = arith.constant 0 : index
    %c0_57 = arith.constant 0 : index
    %120 = vector.load %arg8[%c0_56, %c0_57] : memref<8x128xf32, #tpu.memory_space<vmem>>, vector<8x128xf32>
    tpu.vector_store %arg8[%c0_56, %c0_57], %119 {strides = array<i32>} : memref<8x128xf32, #tpu.memory_space<vmem>>, vector<8x128xf32>,
    %c0_58 = arith.constant 0 : index
    %c0_59 = arith.constant 0 : index
    %121 = vector.load %arg9[%c0_58, %c0_59] : memref<8x128xf32, #tpu.memory_space<vmem>>, vector<8x128xf32>
    tpu.vector_store %arg9[%c0_58, %c0_59], %117 {strides = array<i32>} : memref<8x128xf32, #tpu.memory_space<vmem>>, vector<8x128xf32>,
    %c3_i32 = arith.constant 3 : i32
    %c0_60 = arith.constant 0 : index
    %c0_61 = arith.constant 0 : index
    %122 = vector.load %arg8[%c0_60, %c0_61] : memref<8x128xf32, #tpu.memory_space<vmem>>, vector<8x128xf32>
    %c0_62 = arith.constant 0 : index
    %c0_63 = arith.constant 0 : index
    %123 = vector.load %arg9[%c0_62, %c0_63] : memref<8x128xf32, #tpu.memory_space<vmem>>, vector<8x128xf32>
    %c8_i32_64 = arith.constant 8 : i32
    %124 = arith.muli %c3_i32, %c8_i32_64 : i32
    %125 = tpu.assume_multiple %124, 8 : i32
    %126 = arith.index_cast %125 : i32 to index
    %c0_65 = arith.constant 0 : index
    %127 = vector.load %arg7[%126, %c0_65] : memref<64x512xf32, #tpu.memory_space<vmem>>, vector<8x512xf32>
    %128 = arith.truncf %122 : vector<8x128xf32> to vector<8x128xbf16>
    %c0_66 = arith.constant 0 : index
    %c0_67 = arith.constant 0 : index
    %129 = vector.load %arg2[%c0_66, %c0_67] : memref<128x512xbf16, #tpu.memory_space<vmem>>, vector<128x512xbf16>
    %cst_68 = arith.constant dense<0.000000e+00> : vector<8x512xf32>
    %130 = tpu.matmul %128, %129, %cst_68 {dimension_numbers = #tpu.dot_dimension_numbers<[1], [0], [0], [1], [0, 0, 1, 1], [], []>} : vector<8x128xbf16>, vector<128x512xbf16>, vector<8x512xf32> -> vector<8x512xf32>
    %131 = arith.addf %127, %130 : vector<8x512xf32>
    %132 = vector.extract_strided_slice %131 {offsets = [0, 0], sizes = [8, 128], strides = [1, 1]} : vector<8x512xf32> to vector<8x128xf32>
    %133 = arith.negf %132 : vector<8x128xf32>
    %134 = math.exp %133 : vector<8x128xf32>
    %cst_69 = arith.constant 1.000000e+00 : f32
    %135 = vector.broadcast %cst_69 : f32 to vector<8x128xf32>
    %136 = arith.addf %135, %134 : vector<8x128xf32>
    %137 = arith.divf %135, %136 : vector<8x128xf32>
    %138 = vector.extract_strided_slice %131 {offsets = [0, 128], sizes = [8, 128], strides = [1, 1]} : vector<8x512xf32> to vector<8x128xf32>
    %139 = arith.negf %138 : vector<8x128xf32>
    %140 = math.exp %139 : vector<8x128xf32>
    %cst_70 = arith.constant 1.000000e+00 : f32
    %141 = vector.broadcast %cst_70 : f32 to vector<8x128xf32>
    %142 = arith.addf %141, %140 : vector<8x128xf32>
    %143 = arith.divf %141, %142 : vector<8x128xf32>
    %144 = vector.extract_strided_slice %131 {offsets = [0, 256], sizes = [8, 128], strides = [1, 1]} : vector<8x512xf32> to vector<8x128xf32>
    %145 = math.tanh %144 : vector<8x128xf32>
    %146 = vector.extract_strided_slice %131 {offsets = [0, 384], sizes = [8, 128], strides = [1, 1]} : vector<8x512xf32> to vector<8x128xf32>
    %147 = arith.negf %146 : vector<8x128xf32>
    %148 = math.exp %147 : vector<8x128xf32>
    %cst_71 = arith.constant 1.000000e+00 : f32
    %149 = vector.broadcast %cst_71 : f32 to vector<8x128xf32>
    %150 = arith.addf %149, %148 : vector<8x128xf32>
    %151 = arith.divf %149, %150 : vector<8x128xf32>
    %152 = arith.mulf %143, %123 : vector<8x128xf32>
    %153 = arith.mulf %137, %145 : vector<8x128xf32>
    %154 = arith.addf %152, %153 : vector<8x128xf32>
    %155 = math.tanh %154 : vector<8x128xf32>
    %156 = arith.mulf %151, %155 : vector<8x128xf32>
    %c0_72 = arith.constant 0 : index
    %c0_73 = arith.constant 0 : index
    %157 = vector.load %arg8[%c0_72, %c0_73] : memref<8x128xf32, #tpu.memory_space<vmem>>, vector<8x128xf32>
    tpu.vector_store %arg8[%c0_72, %c0_73], %156 {strides = array<i32>} : memref<8x128xf32, #tpu.memory_space<vmem>>, vector<8x128xf32>,
    %c0_74 = arith.constant 0 : index
    %c0_75 = arith.constant 0 : index
    %158 = vector.load %arg9[%c0_74, %c0_75] : memref<8x128xf32, #tpu.memory_space<vmem>>, vector<8x128xf32>
    tpu.vector_store %arg9[%c0_74, %c0_75], %154 {strides = array<i32>} : memref<8x128xf32, #tpu.memory_space<vmem>>, vector<8x128xf32>,
    %c4_i32 = arith.constant 4 : i32
    %c0_76 = arith.constant 0 : index
    %c0_77 = arith.constant 0 : index
    %159 = vector.load %arg8[%c0_76, %c0_77] : memref<8x128xf32, #tpu.memory_space<vmem>>, vector<8x128xf32>
    %c0_78 = arith.constant 0 : index
    %c0_79 = arith.constant 0 : index
    %160 = vector.load %arg9[%c0_78, %c0_79] : memref<8x128xf32, #tpu.memory_space<vmem>>, vector<8x128xf32>
    %c8_i32_80 = arith.constant 8 : i32
    %161 = arith.muli %c4_i32, %c8_i32_80 : i32
    %162 = tpu.assume_multiple %161, 8 : i32
    %163 = arith.index_cast %162 : i32 to index
    %c0_81 = arith.constant 0 : index
    %164 = vector.load %arg7[%163, %c0_81] : memref<64x512xf32, #tpu.memory_space<vmem>>, vector<8x512xf32>
    %165 = arith.truncf %159 : vector<8x128xf32> to vector<8x128xbf16>
    %c0_82 = arith.constant 0 : index
    %c0_83 = arith.constant 0 : index
    %166 = vector.load %arg2[%c0_82, %c0_83] : memref<128x512xbf16, #tpu.memory_space<vmem>>, vector<128x512xbf16>
    %cst_84 = arith.constant dense<0.000000e+00> : vector<8x512xf32>
    %167 = tpu.matmul %165, %166, %cst_84 {dimension_numbers = #tpu.dot_dimension_numbers<[1], [0], [0], [1], [0, 0, 1, 1], [], []>} : vector<8x128xbf16>, vector<128x512xbf16>, vector<8x512xf32> -> vector<8x512xf32>
    %168 = arith.addf %164, %167 : vector<8x512xf32>
    %169 = vector.extract_strided_slice %168 {offsets = [0, 0], sizes = [8, 128], strides = [1, 1]} : vector<8x512xf32> to vector<8x128xf32>
    %170 = arith.negf %169 : vector<8x128xf32>
    %171 = math.exp %170 : vector<8x128xf32>
    %cst_85 = arith.constant 1.000000e+00 : f32
    %172 = vector.broadcast %cst_85 : f32 to vector<8x128xf32>
    %173 = arith.addf %172, %171 : vector<8x128xf32>
    %174 = arith.divf %172, %173 : vector<8x128xf32>
    %175 = vector.extract_strided_slice %168 {offsets = [0, 128], sizes = [8, 128], strides = [1, 1]} : vector<8x512xf32> to vector<8x128xf32>
    %176 = arith.negf %175 : vector<8x128xf32>
    %177 = math.exp %176 : vector<8x128xf32>
    %cst_86 = arith.constant 1.000000e+00 : f32
    %178 = vector.broadcast %cst_86 : f32 to vector<8x128xf32>
    %179 = arith.addf %178, %177 : vector<8x128xf32>
    %180 = arith.divf %178, %179 : vector<8x128xf32>
    %181 = vector.extract_strided_slice %168 {offsets = [0, 256], sizes = [8, 128], strides = [1, 1]} : vector<8x512xf32> to vector<8x128xf32>
    %182 = math.tanh %181 : vector<8x128xf32>
    %183 = vector.extract_strided_slice %168 {offsets = [0, 384], sizes = [8, 128], strides = [1, 1]} : vector<8x512xf32> to vector<8x128xf32>
    %184 = arith.negf %183 : vector<8x128xf32>
    %185 = math.exp %184 : vector<8x128xf32>
    %cst_87 = arith.constant 1.000000e+00 : f32
    %186 = vector.broadcast %cst_87 : f32 to vector<8x128xf32>
    %187 = arith.addf %186, %185 : vector<8x128xf32>
    %188 = arith.divf %186, %187 : vector<8x128xf32>
    %189 = arith.mulf %180, %160 : vector<8x128xf32>
    %190 = arith.mulf %174, %182 : vector<8x128xf32>
    %191 = arith.addf %189, %190 : vector<8x128xf32>
    %192 = math.tanh %191 : vector<8x128xf32>
    %193 = arith.mulf %188, %192 : vector<8x128xf32>
    %c0_88 = arith.constant 0 : index
    %c0_89 = arith.constant 0 : index
    %194 = vector.load %arg8[%c0_88, %c0_89] : memref<8x128xf32, #tpu.memory_space<vmem>>, vector<8x128xf32>
    tpu.vector_store %arg8[%c0_88, %c0_89], %193 {strides = array<i32>} : memref<8x128xf32, #tpu.memory_space<vmem>>, vector<8x128xf32>,
    %c0_90 = arith.constant 0 : index
    %c0_91 = arith.constant 0 : index
    %195 = vector.load %arg9[%c0_90, %c0_91] : memref<8x128xf32, #tpu.memory_space<vmem>>, vector<8x128xf32>
    tpu.vector_store %arg9[%c0_90, %c0_91], %191 {strides = array<i32>} : memref<8x128xf32, #tpu.memory_space<vmem>>, vector<8x128xf32>,
    %c5_i32 = arith.constant 5 : i32
    %c0_92 = arith.constant 0 : index
    %c0_93 = arith.constant 0 : index
    %196 = vector.load %arg8[%c0_92, %c0_93] : memref<8x128xf32, #tpu.memory_space<vmem>>, vector<8x128xf32>
    %c0_94 = arith.constant 0 : index
    %c0_95 = arith.constant 0 : index
    %197 = vector.load %arg9[%c0_94, %c0_95] : memref<8x128xf32, #tpu.memory_space<vmem>>, vector<8x128xf32>
    %c8_i32_96 = arith.constant 8 : i32
    %198 = arith.muli %c5_i32, %c8_i32_96 : i32
    %199 = tpu.assume_multiple %198, 8 : i32
    %200 = arith.index_cast %199 : i32 to index
    %c0_97 = arith.constant 0 : index
    %201 = vector.load %arg7[%200, %c0_97] : memref<64x512xf32, #tpu.memory_space<vmem>>, vector<8x512xf32>
    %202 = arith.truncf %196 : vector<8x128xf32> to vector<8x128xbf16>
    %c0_98 = arith.constant 0 : index
    %c0_99 = arith.constant 0 : index
    %203 = vector.load %arg2[%c0_98, %c0_99] : memref<128x512xbf16, #tpu.memory_space<vmem>>, vector<128x512xbf16>
    %cst_100 = arith.constant dense<0.000000e+00> : vector<8x512xf32>
    %204 = tpu.matmul %202, %203, %cst_100 {dimension_numbers = #tpu.dot_dimension_numbers<[1], [0], [0], [1], [0, 0, 1, 1], [], []>} : vector<8x128xbf16>, vector<128x512xbf16>, vector<8x512xf32> -> vector<8x512xf32>
    %205 = arith.addf %201, %204 : vector<8x512xf32>
    %206 = vector.extract_strided_slice %205 {offsets = [0, 0], sizes = [8, 128], strides = [1, 1]} : vector<8x512xf32> to vector<8x128xf32>
    %207 = arith.negf %206 : vector<8x128xf32>
    %208 = math.exp %207 : vector<8x128xf32>
    %cst_101 = arith.constant 1.000000e+00 : f32
    %209 = vector.broadcast %cst_101 : f32 to vector<8x128xf32>
    %210 = arith.addf %209, %208 : vector<8x128xf32>
    %211 = arith.divf %209, %210 : vector<8x128xf32>
    %212 = vector.extract_strided_slice %205 {offsets = [0, 128], sizes = [8, 128], strides = [1, 1]} : vector<8x512xf32> to vector<8x128xf32>
    %213 = arith.negf %212 : vector<8x128xf32>
    %214 = math.exp %213 : vector<8x128xf32>
    %cst_102 = arith.constant 1.000000e+00 : f32
    %215 = vector.broadcast %cst_102 : f32 to vector<8x128xf32>
    %216 = arith.addf %215, %214 : vector<8x128xf32>
    %217 = arith.divf %215, %216 : vector<8x128xf32>
    %218 = vector.extract_strided_slice %205 {offsets = [0, 256], sizes = [8, 128], strides = [1, 1]} : vector<8x512xf32> to vector<8x128xf32>
    %219 = math.tanh %218 : vector<8x128xf32>
    %220 = vector.extract_strided_slice %205 {offsets = [0, 384], sizes = [8, 128], strides = [1, 1]} : vector<8x512xf32> to vector<8x128xf32>
    %221 = arith.negf %220 : vector<8x128xf32>
    %222 = math.exp %221 : vector<8x128xf32>
    %cst_103 = arith.constant 1.000000e+00 : f32
    %223 = vector.broadcast %cst_103 : f32 to vector<8x128xf32>
    %224 = arith.addf %223, %222 : vector<8x128xf32>
    %225 = arith.divf %223, %224 : vector<8x128xf32>
    %226 = arith.mulf %217, %197 : vector<8x128xf32>
    %227 = arith.mulf %211, %219 : vector<8x128xf32>
    %228 = arith.addf %226, %227 : vector<8x128xf32>
    %229 = math.tanh %228 : vector<8x128xf32>
    %230 = arith.mulf %225, %229 : vector<8x128xf32>
    %c0_104 = arith.constant 0 : index
    %c0_105 = arith.constant 0 : index
    %231 = vector.load %arg8[%c0_104, %c0_105] : memref<8x128xf32, #tpu.memory_space<vmem>>, vector<8x128xf32>
    tpu.vector_store %arg8[%c0_104, %c0_105], %230 {strides = array<i32>} : memref<8x128xf32, #tpu.memory_space<vmem>>, vector<8x128xf32>,
    %c0_106 = arith.constant 0 : index
    %c0_107 = arith.constant 0 : index
    %232 = vector.load %arg9[%c0_106, %c0_107] : memref<8x128xf32, #tpu.memory_space<vmem>>, vector<8x128xf32>
    tpu.vector_store %arg9[%c0_106, %c0_107], %228 {strides = array<i32>} : memref<8x128xf32, #tpu.memory_space<vmem>>, vector<8x128xf32>,
    %c6_i32 = arith.constant 6 : i32
    %c0_108 = arith.constant 0 : index
    %c0_109 = arith.constant 0 : index
    %233 = vector.load %arg8[%c0_108, %c0_109] : memref<8x128xf32, #tpu.memory_space<vmem>>, vector<8x128xf32>
    %c0_110 = arith.constant 0 : index
    %c0_111 = arith.constant 0 : index
    %234 = vector.load %arg9[%c0_110, %c0_111] : memref<8x128xf32, #tpu.memory_space<vmem>>, vector<8x128xf32>
    %c8_i32_112 = arith.constant 8 : i32
    %235 = arith.muli %c6_i32, %c8_i32_112 : i32
    %236 = tpu.assume_multiple %235, 8 : i32
    %237 = arith.index_cast %236 : i32 to index
    %c0_113 = arith.constant 0 : index
    %238 = vector.load %arg7[%237, %c0_113] : memref<64x512xf32, #tpu.memory_space<vmem>>, vector<8x512xf32>
    %239 = arith.truncf %233 : vector<8x128xf32> to vector<8x128xbf16>
    %c0_114 = arith.constant 0 : index
    %c0_115 = arith.constant 0 : index
    %240 = vector.load %arg2[%c0_114, %c0_115] : memref<128x512xbf16, #tpu.memory_space<vmem>>, vector<128x512xbf16>
    %cst_116 = arith.constant dense<0.000000e+00> : vector<8x512xf32>
    %241 = tpu.matmul %239, %240, %cst_116 {dimension_numbers = #tpu.dot_dimension_numbers<[1], [0], [0], [1], [0, 0, 1, 1], [], []>} : vector<8x128xbf16>, vector<128x512xbf16>, vector<8x512xf32> -> vector<8x512xf32>
    %242 = arith.addf %238, %241 : vector<8x512xf32>
    %243 = vector.extract_strided_slice %242 {offsets = [0, 0], sizes = [8, 128], strides = [1, 1]} : vector<8x512xf32> to vector<8x128xf32>
    %244 = arith.negf %243 : vector<8x128xf32>
    %245 = math.exp %244 : vector<8x128xf32>
    %cst_117 = arith.constant 1.000000e+00 : f32
    %246 = vector.broadcast %cst_117 : f32 to vector<8x128xf32>
    %247 = arith.addf %246, %245 : vector<8x128xf32>
    %248 = arith.divf %246, %247 : vector<8x128xf32>
    %249 = vector.extract_strided_slice %242 {offsets = [0, 128], sizes = [8, 128], strides = [1, 1]} : vector<8x512xf32> to vector<8x128xf32>
    %250 = arith.negf %249 : vector<8x128xf32>
    %251 = math.exp %250 : vector<8x128xf32>
    %cst_118 = arith.constant 1.000000e+00 : f32
    %252 = vector.broadcast %cst_118 : f32 to vector<8x128xf32>
    %253 = arith.addf %252, %251 : vector<8x128xf32>
    %254 = arith.divf %252, %253 : vector<8x128xf32>
    %255 = vector.extract_strided_slice %242 {offsets = [0, 256], sizes = [8, 128], strides = [1, 1]} : vector<8x512xf32> to vector<8x128xf32>
    %256 = math.tanh %255 : vector<8x128xf32>
    %257 = vector.extract_strided_slice %242 {offsets = [0, 384], sizes = [8, 128], strides = [1, 1]} : vector<8x512xf32> to vector<8x128xf32>
    %258 = arith.negf %257 : vector<8x128xf32>
    %259 = math.exp %258 : vector<8x128xf32>
    %cst_119 = arith.constant 1.000000e+00 : f32
    %260 = vector.broadcast %cst_119 : f32 to vector<8x128xf32>
    %261 = arith.addf %260, %259 : vector<8x128xf32>
    %262 = arith.divf %260, %261 : vector<8x128xf32>
    %263 = arith.mulf %254, %234 : vector<8x128xf32>
    %264 = arith.mulf %248, %256 : vector<8x128xf32>
    %265 = arith.addf %263, %264 : vector<8x128xf32>
    %266 = math.tanh %265 : vector<8x128xf32>
    %267 = arith.mulf %262, %266 : vector<8x128xf32>
    %c0_120 = arith.constant 0 : index
    %c0_121 = arith.constant 0 : index
    %268 = vector.load %arg8[%c0_120, %c0_121] : memref<8x128xf32, #tpu.memory_space<vmem>>, vector<8x128xf32>
    tpu.vector_store %arg8[%c0_120, %c0_121], %267 {strides = array<i32>} : memref<8x128xf32, #tpu.memory_space<vmem>>, vector<8x128xf32>,
    %c0_122 = arith.constant 0 : index
    %c0_123 = arith.constant 0 : index
    %269 = vector.load %arg9[%c0_122, %c0_123] : memref<8x128xf32, #tpu.memory_space<vmem>>, vector<8x128xf32>
    tpu.vector_store %arg9[%c0_122, %c0_123], %265 {strides = array<i32>} : memref<8x128xf32, #tpu.memory_space<vmem>>, vector<8x128xf32>,
    %c7_i32 = arith.constant 7 : i32
    %c0_124 = arith.constant 0 : index
    %c0_125 = arith.constant 0 : index
    %270 = vector.load %arg8[%c0_124, %c0_125] : memref<8x128xf32, #tpu.memory_space<vmem>>, vector<8x128xf32>
    %c0_126 = arith.constant 0 : index
    %c0_127 = arith.constant 0 : index
    %271 = vector.load %arg9[%c0_126, %c0_127] : memref<8x128xf32, #tpu.memory_space<vmem>>, vector<8x128xf32>
    %c8_i32_128 = arith.constant 8 : i32
    %272 = arith.muli %c7_i32, %c8_i32_128 : i32
    %273 = tpu.assume_multiple %272, 8 : i32
    %274 = arith.index_cast %273 : i32 to index
    %c0_129 = arith.constant 0 : index
    %275 = vector.load %arg7[%274, %c0_129] : memref<64x512xf32, #tpu.memory_space<vmem>>, vector<8x512xf32>
    %276 = arith.truncf %270 : vector<8x128xf32> to vector<8x128xbf16>
    %c0_130 = arith.constant 0 : index
    %c0_131 = arith.constant 0 : index
    %277 = vector.load %arg2[%c0_130, %c0_131] : memref<128x512xbf16, #tpu.memory_space<vmem>>, vector<128x512xbf16>
    %cst_132 = arith.constant dense<0.000000e+00> : vector<8x512xf32>
    %278 = tpu.matmul %276, %277, %cst_132 {dimension_numbers = #tpu.dot_dimension_numbers<[1], [0], [0], [1], [0, 0, 1, 1], [], []>} : vector<8x128xbf16>, vector<128x512xbf16>, vector<8x512xf32> -> vector<8x512xf32>
    %279 = arith.addf %275, %278 : vector<8x512xf32>
    %280 = vector.extract_strided_slice %279 {offsets = [0, 0], sizes = [8, 128], strides = [1, 1]} : vector<8x512xf32> to vector<8x128xf32>
    %281 = arith.negf %280 : vector<8x128xf32>
    %282 = math.exp %281 : vector<8x128xf32>
    %cst_133 = arith.constant 1.000000e+00 : f32
    %283 = vector.broadcast %cst_133 : f32 to vector<8x128xf32>
    %284 = arith.addf %283, %282 : vector<8x128xf32>
    %285 = arith.divf %283, %284 : vector<8x128xf32>
    %286 = vector.extract_strided_slice %279 {offsets = [0, 128], sizes = [8, 128], strides = [1, 1]} : vector<8x512xf32> to vector<8x128xf32>
    %287 = arith.negf %286 : vector<8x128xf32>
    %288 = math.exp %287 : vector<8x128xf32>
    %cst_134 = arith.constant 1.000000e+00 : f32
    %289 = vector.broadcast %cst_134 : f32 to vector<8x128xf32>
    %290 = arith.addf %289, %288 : vector<8x128xf32>
    %291 = arith.divf %289, %290 : vector<8x128xf32>
    %292 = vector.extract_strided_slice %279 {offsets = [0, 256], sizes = [8, 128], strides = [1, 1]} : vector<8x512xf32> to vector<8x128xf32>
    %293 = math.tanh %292 : vector<8x128xf32>
    %294 = vector.extract_strided_slice %279 {offsets = [0, 384], sizes = [8, 128], strides = [1, 1]} : vector<8x512xf32> to vector<8x128xf32>
    %295 = arith.negf %294 : vector<8x128xf32>
    %296 = math.exp %295 : vector<8x128xf32>
    %cst_135 = arith.constant 1.000000e+00 : f32
    %297 = vector.broadcast %cst_135 : f32 to vector<8x128xf32>
    %298 = arith.addf %297, %296 : vector<8x128xf32>
    %299 = arith.divf %297, %298 : vector<8x128xf32>
    %300 = arith.mulf %291, %271 : vector<8x128xf32>
    %301 = arith.mulf %285, %293 : vector<8x128xf32>
    %302 = arith.addf %300, %301 : vector<8x128xf32>
    %303 = math.tanh %302 : vector<8x128xf32>
    %304 = arith.mulf %299, %303 : vector<8x128xf32>
    %c0_136 = arith.constant 0 : index
    %c0_137 = arith.constant 0 : index
    %305 = vector.load %arg8[%c0_136, %c0_137] : memref<8x128xf32, #tpu.memory_space<vmem>>, vector<8x128xf32>
    tpu.vector_store %arg8[%c0_136, %c0_137], %304 {strides = array<i32>} : memref<8x128xf32, #tpu.memory_space<vmem>>, vector<8x128xf32>,
    %c0_138 = arith.constant 0 : index
    %c0_139 = arith.constant 0 : index
    %306 = vector.load %arg9[%c0_138, %c0_139] : memref<8x128xf32, #tpu.memory_space<vmem>>, vector<8x128xf32>
    tpu.vector_store %arg9[%c0_138, %c0_139], %302 {strides = array<i32>} : memref<8x128xf32, #tpu.memory_space<vmem>>, vector<8x128xf32>,
    %c8_i32_140 = arith.constant 8 : i32
    %c0_141 = arith.constant 0 : index
    %c0_142 = arith.constant 0 : index
    %307 = vector.load %arg8[%c0_141, %c0_142] : memref<8x128xf32, #tpu.memory_space<vmem>>, vector<8x128xf32>
    %308 = arith.truncf %307 : vector<8x128xf32> to vector<8x128xbf16>
    %c0_143 = arith.constant 0 : index
    %c0_144 = arith.constant 0 : index
    %309 = vector.load %arg4[%c0_143, %c0_144] : memref<128x128xbf16, #tpu.memory_space<vmem>>, vector<128x128xbf16>
    %cst_145 = arith.constant dense<0.000000e+00> : vector<8x128xf32>
    %310 = tpu.matmul %308, %309, %cst_145 {dimension_numbers = #tpu.dot_dimension_numbers<[1], [0], [0], [1], [0, 0, 1, 1], [], []>} : vector<8x128xbf16>, vector<128x128xbf16>, vector<8x128xf32> -> vector<8x128xf32>
    %c0_146 = arith.constant 0 : index
    %c0_147 = arith.constant 0 : index
    %311 = vector.load %arg5[%c0_146, %c0_147] : memref<1x128xf32, #tpu.memory_space<vmem>>, vector<1x128xf32>
    %312 = vector.broadcast %311 : vector<1x128xf32> to vector<8x128xf32>
    %313 = arith.addf %310, %312 : vector<8x128xf32>
    %c0_148 = arith.constant 0 : index
    %c0_149 = arith.constant 0 : index
    %314 = vector.load %arg6[%c0_148, %c0_149] : memref<8x128xf32, #tpu.memory_space<vmem>>, vector<8x128xf32>
    tpu.vector_store %arg6[%c0_148, %c0_149], %313 {strides = array<i32>} : memref<8x128xf32, #tpu.memory_space<vmem>>, vector<8x128xf32>,
    return
  }
}

</mosaic_0001>

<bundles_post_ra>
// kernel: simple_lstm_forward.1
= control target key start
LH: loop header
LB: loop body
LE: loop exit
PB: predicated region body
PF: predicated region fallthrough
CT: control target
= control target key end

     0   :  { %v4501_v1 = vmov 0   ;;  %vm170_vm0 = vcmask 523264   ;;  %v3611_v53 = vmov 0.0|0.0   ;;  %v50_v54 = vlaneseq  ;;  %s4494_s1 = inlined_call_operand.vmem [shape: bf16[64,512], index: 1, kind: input, shape index: {}]   ;;  %s4495_s0 = inlined_call_operand.vmem [shape: bf16[64,64], index: 0, kind: input, shape index: {}]   ;;  %s4496_s2 = inlined_call_operand.vmem [shape: bf16[128,512], index: 2, kind: input, shape index: {}]   ;;  %s4497_s3 = inlined_call_operand.vmem [shape: f32[1,512], index: 3, kind: input, shape index: {}]   ;;  %s4498_s4 = inlined_call_operand.vmem [shape: bf16[128,128], index: 4, kind: input, shape index: {}]   ;;  %s4499_s5 = inlined_call_operand.vmem [shape: f32[1,128], index: 5, kind: input, shape index: {}]   ;;  %s4500_s6 = inlined_call_operand.vmem [shape: f32[8,128], index: 6, kind: output, shape index: {}]  }
   0x1   :  { %v3350_v0 = vld [vmem:[%s4494_s1 + $0x64] ss:$16 sps:$4 sm:$0xff]   ;;  %215 = vmatprep.mubr.bf16.mxu0 %v4501_v1  ;;  %288 = vmatprep.mubr.bf16.mxu1 %v4501_v1  ;;  %v3352_v2 = vld [vmem:[%s4494_s1 + $0x6c] ss:$16 sps:$4 sm:$0xff]   ;;  %v3354_v3 = vld [vmem:[%s4494_s1 + $0x60] ss:$16 sps:$4 sm:$0xff]  }
   0x2   :  { %191 = vmatprep.subr.bf16.mxu0 %v3350_v0  ;;  %v3355_v4 = vld [vmem:[%s4494_s1 + $0x68] ss:$16 sps:$4 sm:$0xff]   ;;  %264 = vmatprep.subr.bf16.mxu1 %v3352_v2  ;;  %v3356_v5 = vld [vmem:[%s4494_s1 + $0x44] ss:$16 sps:$4 sm:$0xff]   ;;  %v3358_v6 = vld [vmem:[%s4494_s1 + $0x4c] ss:$16 sps:$4 sm:$0xff]  }
   0x3   :  { %192 = vmatpush1.bf16.msra.mxu0 %v3354_v3  ;;  %265 = vmatpush1.bf16.msra.mxu1 %v3355_v4  ;;  %v3360_v7 = vld [vmem:[%s4494_s1 + $0x40] ss:$16 sps:$4 sm:$0xff]   ;;  %v3361_v8 = vld [vmem:[%s4494_s1 + $0x48] ss:$16 sps:$4 sm:$0xff]   ;;  %v3362_v9 = vld [vmem:[%s4494_s1 + $0x24] ss:$16 sps:$4 sm:$0xff]  }
   0x4   :  { %193 = vmatprep.subr.bf16.mxu0 %v3356_v5  ;;  %266 = vmatprep.subr.bf16.mxu1 %v3358_v6  ;;  %v3364_v10 = vld [vmem:[%s4494_s1 + $0x2c] ss:$16 sps:$4 sm:$0xff]   ;;  %v3366_v11 = vld [vmem:[%s4494_s1 + $0x20] ss:$16 sps:$4 sm:$0xff]   ;;  %v3367_v12 = vld [vmem:[%s4494_s1 + $0x28] ss:$16 sps:$4 sm:$0xff]  }
   0x5   :  { %v3368_v13 = vld [vmem:[%s4494_s1 + $0x4] ss:$16 sps:$4 sm:$0xff]   ;;  %v3370_v14 = vld [vmem:[%s4494_s1 + $0xc] ss:$16 sps:$4 sm:$0xff]   ;;  %v3372_v15 = vld [vmem:[%s4494_s1] ss:$16 sps:$4 sm:$0xff]  }
   0x6   :  { %v3373_v16 = vld [vmem:[%s4494_s1 + $0x8] ss:$16 sps:$4 sm:$0xff]   ;;  %v3702_v17 = vld [vmem:[%s4496_s2 + $0xe4] ss:$16 sps:$4 sm:$0xff]   ;;  %v3707_v18 = vld [vmem:[%s4496_s2 + $0xec] ss:$16 sps:$4 sm:$0xff]  }
   0x7   :  { %194 = vmatpush1.bf16.msra.mxu0 %v3360_v7  ;;  %267 = vmatpush1.bf16.msra.mxu1 %v3361_v8  ;;  %v3374_v19 = vld [vmem:[%s4495_s0] sm:$0xff]   ;;  %v3720_v21 = vld [vmem:[%s4496_s2 + $0xe8] ss:$16 sps:$4 sm:$0xff]   ;;  %v3732_v23 = vld [vmem:[%s4496_s2 + $0xcc] ss:$16 sps:$4 sm:$0xff]   ;;  %v51_v55 = vshrl.u32 %v50_v54, 7 }
   0x8   :  { %195 = vmatprep.subr.bf16.mxu0 %v3362_v9  ;;  %268 = vmatprep.subr.bf16.mxu1 %v3364_v10  ;;  %v3715_v20 = vld [vmem:[%s4496_s2 + $0xe0] ss:$16 sps:$4 sm:$0xff]   ;;  %v3725_v22 = vld [vmem:[%s4496_s2 + $0xc4] ss:$16 sps:$4 sm:$0xff]   ;;  %v3746_v25 = vld [vmem:[%s4496_s2 + $0xc8] ss:$16 sps:$4 sm:$0xff]  }
   0x9   :  { %v3741_v24 = vld [vmem:[%s4496_s2 + $0xc0] ss:$16 sps:$4 sm:$0xff]   ;;  %v3753_v26 = vld [vmem:[%s4496_s2 + $0xa4] ss:$16 sps:$4 sm:$0xff]   ;;  %v3758_v27 = vld [vmem:[%s4496_s2 + $0xac] ss:$16 sps:$4 sm:$0xff]  }
   0xa   :  { %v3387_v28 = vld [vmem:[%s4495_s0 + $0x8] sm:$0xff]   ;;  %v3768_v29 = vld [vmem:[%s4496_s2 + $0xa0] ss:$16 sps:$4 sm:$0xff]   ;;  %v3782_v31 = vld [vmem:[%s4496_s2 + $0x84] ss:$16 sps:$4 sm:$0xff]   ;;  %v60_v56 = vsub.s32 2, %v51_v55 }
   0xb   :  { %196 = vmatpush1.bf16.msra.mxu0 %v3366_v11  ;;  %269 = vmatpush1.bf16.msra.mxu1 %v3367_v12  ;;  %v3775_v30 = vld [vmem:[%s4496_s2 + $0xa8] ss:$16 sps:$4 sm:$0xff]   ;;  %v3787_v32 = vld [vmem:[%s4496_s2 + $0x8c] ss:$16 sps:$4 sm:$0xff]   ;;  %v3794_v33 = vld [vmem:[%s4496_s2 + $0x80] ss:$16 sps:$4 sm:$0xff]  }
   0xc   :  { %197 = vmatprep.subr.bf16.mxu0 %v3368_v13  ;;  %270 = vmatprep.subr.bf16.mxu1 %v3370_v14  ;;  %v3801_v34 = vld [vmem:[%s4496_s2 + $0x88] ss:$16 sps:$4 sm:$0xff]   ;;  %v3808_v35 = vld [vmem:[%s4496_s2 + $0x64] ss:$16 sps:$4 sm:$0xff]   ;;  %v3813_v36 = vld [vmem:[%s4496_s2 + $0x6c] ss:$16 sps:$4 sm:$0xff]  }
   0xd   :  { %v3400_v37 = vld [vmem:[%s4495_s0 + $0x10] sm:$0xff]   ;;  %v3828_v39 = vld [vmem:[%s4496_s2 + $0x68] ss:$16 sps:$4 sm:$0xff]   ;;  %v3842_v41 = vld [vmem:[%s4496_s2 + $0x4c] ss:$16 sps:$4 sm:$0xff]   ;;  %v52_v57 = vsub.s32 0, %v51_v55 }
   0xe   :  { %v3823_v38 = vld [vmem:[%s4496_s2 + $0x60] ss:$16 sps:$4 sm:$0xff]   ;;  %v3835_v40 = vld [vmem:[%s4496_s2 + $0x44] ss:$16 sps:$4 sm:$0xff]   ;;  %v3854_v43 = vld [vmem:[%s4496_s2 + $0x48] ss:$16 sps:$4 sm:$0xff]  }
   0xf   :  { %198 = vmatpush1.bf16.msra.mxu0 %v3372_v15  ;;  %271 = vmatpush1.bf16.msra.mxu1 %v3373_v16  ;;  %v3847_v42 = vld [vmem:[%s4496_s2 + $0x40] ss:$16 sps:$4 sm:$0xff]   ;;  %v3859_v44 = vld [vmem:[%s4496_s2 + $0x24] ss:$16 sps:$4 sm:$0xff]   ;;  %v3866_v45 = vld [vmem:[%s4496_s2 + $0x2c] ss:$16 sps:$4 sm:$0xff]  }
  0x10   :  { %565 = vmatprep.subr.bf16.mxu0 %v3702_v17  ;;  %606 = vmatprep.subr.bf16.mxu1 %v3707_v18  ;;  %v3413_v46 = vld [vmem:[%s4495_s0 + $0x18] sm:$0xff]   ;;  %v3878_v47 = vld [vmem:[%s4496_s2 + $0x20] ss:$16 sps:$4 sm:$0xff]   ;;  %v3888_v49 = vld [vmem:[%s4496_s2 + $0x4] ss:$16 sps:$4 sm:$0xff]   ;;  %v64_v58 = vsub.s32 3, %v51_v55 }
  0x11   :  { %v3883_v48 = vld [vmem:[%s4496_s2 + $0x28] ss:$16 sps:$4 sm:$0xff]   ;;  %v3893_v50 = vld [vmem:[%s4496_s2 + $0xc] ss:$16 sps:$4 sm:$0xff]   ;;  %v3902_v51 = vld [vmem:[%s4496_s2] ss:$16 sps:$4 sm:$0xff]  }
  0x12   :  { %3020 = vmatmul.mubr.msk.bf16.vlgmr.msra.gmra.mxu0 %vm170_vm0, %v3374_v19  ;;  %3024 = vmatmul.mubr.msk.bf16.vlgmr.msra.gmra.mxu1 %vm170_vm0, %v3374_v19  ;;  %v3907_v52 = vld [vmem:[%s4496_s2 + $0x8] ss:$16 sps:$4 sm:$0xff]   ;;  %v48_v59 = vld [vmem:[%s4497_s3] sm:$0xf]  ;;  %v56_v63 = vsub.s32 1, %v51_v55  ;;  %vm3613_vm1 = vmmov 0  }
  0x13   :  { %566 = vmatpush1.bf16.msra.mxu0 %v3715_v20  ;;  %607 = vmatpush1.bf16.msra.mxu1 %v3720_v21  ;;  %v3962_v62 = vrot.slane %v48_v59, %v60_v56  ;;  %v53_v3 = vrot.slane %v48_v59, %v52_v57  ;;  %v3968_v4 = vrot.slane %v48_v59, %v64_v58 }
  0x14   :  { %567 = vmatprep.subr.bf16.mxu0 %v3725_v22  ;;  %608 = vmatprep.subr.bf16.mxu1 %v3732_v23  ;;  %v57_v7 = vrot.slane %v48_v59, %v56_v63 }
  0x15   :  { %225 = vmatprep.mubr.bf16.mxu0 %v4501_v1  ;;  %298 = vmatprep.mubr.bf16.mxu1 %v4501_v1 }
  0x17   :  { %568 = vmatpush1.bf16.msra.mxu0 %v3741_v24  ;;  %609 = vmatpush1.bf16.msra.mxu1 %v3746_v25 }
  0x18   :  { %569 = vmatprep.subr.bf16.mxu0 %v3753_v26  ;;  %610 = vmatprep.subr.bf16.mxu1 %v3758_v27 }
  0x1a   :  { %3021 = vmatmul.mubr.msk.bf16.gmra.mxu0 %vm170_vm0, %v3387_v28  ;;  %3025 = vmatmul.mubr.msk.bf16.gmra.mxu1 %vm170_vm0, %v3387_v28 }
  0x1b   :  { %570 = vmatpush1.bf16.msra.mxu0 %v3768_v29  ;;  %611 = vmatpush1.bf16.msra.mxu1 %v3775_v30 }
  0x1c   :  { %571 = vmatprep.subr.bf16.mxu0 %v3782_v31  ;;  %612 = vmatprep.subr.bf16.mxu1 %v3787_v32 }
  0x1d   :  { %235 = vmatprep.mubr.bf16.mxu0 %v4501_v1  ;;  %308 = vmatprep.mubr.bf16.mxu1 %v4501_v1 }
  0x1f   :  { %572 = vmatpush1.bf16.msra.mxu0 %v3794_v33  ;;  %613 = vmatpush1.bf16.msra.mxu1 %v3801_v34 }
  0x20   :  { %573 = vmatprep.subr.bf16.mxu0 %v3808_v35  ;;  %614 = vmatprep.subr.bf16.mxu1 %v3813_v36 }
  0x22   :  { %3022 = vmatmul.mubr.msk.bf16.gmra.mxu0 %vm170_vm0, %v3400_v37  ;;  %3026 = vmatmul.mubr.msk.bf16.gmra.mxu1 %vm170_vm0, %v3400_v37 }
  0x23   :  { %574 = vmatpush1.bf16.msra.mxu0 %v3823_v38  ;;  %615 = vmatpush1.bf16.msra.mxu1 %v3828_v39 }
  0x24   :  { %575 = vmatprep.subr.bf16.mxu0 %v3835_v40  ;;  %616 = vmatprep.subr.bf16.mxu1 %v3842_v41 }
  0x25   :  { %245 = vmatprep.mubr.bf16.mxu0 %v4501_v1  ;;  %318 = vmatprep.mubr.bf16.mxu1 %v4501_v1 }
  0x27   :  { %576 = vmatpush1.bf16.msra.mxu0 %v3847_v42  ;;  %617 = vmatpush1.bf16.msra.mxu1 %v3854_v43 }
  0x28   :  { %577 = vmatprep.subr.bf16.mxu0 %v3859_v44  ;;  %618 = vmatprep.subr.bf16.mxu1 %v3866_v45 }
  0x2a   :  { %3023 = vmatmul.mubr.msk.bf16.gmra.mxu0 %vm170_vm0, %v3413_v46  ;;  %3027 = vmatmul.mubr.msk.bf16.gmra.mxu1 %vm170_vm0, %v3413_v46 }
  0x2b   :  { %578 = vmatpush1.bf16.msra.mxu0 %v3878_v47  ;;  %619 = vmatpush1.bf16.msra.mxu1 %v3883_v48 }
  0x2c   :  { %579 = vmatprep.subr.bf16.mxu0 %v3888_v49  ;;  %620 = vmatprep.subr.bf16.mxu1 %v3893_v50 }
  0x2d   :  { %597 = vmatprep.mubr.bf16.mxu0 %v4501_v1  ;;  %638 = vmatprep.mubr.bf16.mxu1 %v4501_v1 }
  0x2f   :  { %580 = vmatpush1.bf16.msra.mxu0 %v3902_v51  ;;  %621 = vmatpush1.bf16.msra.mxu1 %v3907_v52 }
  0x30   :  { %879 = vmatprep.subr.bf16.mxu0 %v3702_v17  ;;  %920 = vmatprep.subr.bf16.mxu1 %v3707_v18 }
  0x32   :  { %598 = vmatmul.mubr.bf16.vlgmr.msra.gmra.mxu0 %v3611_v53  ;;  %639 = vmatmul.mubr.bf16.vlgmr.msra.gmra.mxu1 %v3611_v53 }
  0x33   :  { %880 = vmatpush1.bf16.msra.mxu0 %v3715_v20  ;;  %921 = vmatpush1.bf16.msra.mxu1 %v3720_v21 }
  0x34   :  { %881 = vmatprep.subr.bf16.mxu0 %v3725_v22  ;;  %922 = vmatprep.subr.bf16.mxu1 %v3732_v23 }
  0x35   :  { %911 = vmatprep.mubr.bf16.mxu0 %v4501_v1  ;;  %952 = vmatprep.mubr.bf16.mxu1 %v4501_v1 }
  0x37   :  { %882 = vmatpush1.bf16.msra.mxu0 %v3741_v24  ;;  %923 = vmatpush1.bf16.msra.mxu1 %v3746_v25 }
  0x38   :  { %883 = vmatprep.subr.bf16.mxu0 %v3753_v26  ;;  %924 = vmatprep.subr.bf16.mxu1 %v3758_v27 }
  0x3b   :  { %884 = vmatpush1.bf16.msra.mxu0 %v3768_v29  ;;  %925 = vmatpush1.bf16.msra.mxu1 %v3775_v30 }
  0x3c   :  { %885 = vmatprep.subr.bf16.mxu0 %v3782_v31  ;;  %926 = vmatprep.subr.bf16.mxu1 %v3787_v32 }
  0x3f   :  { %886 = vmatpush1.bf16.msra.mxu0 %v3794_v33  ;;  %927 = vmatpush1.bf16.msra.mxu1 %v3801_v34 }
  0x40   :  { %887 = vmatprep.subr.bf16.mxu0 %v3808_v35  ;;  %928 = vmatprep.subr.bf16.mxu1 %v3813_v36 }
  0x43   :  { %888 = vmatpush1.bf16.msra.mxu0 %v3823_v38  ;;  %929 = vmatpush1.bf16.msra.mxu1 %v3828_v39 }
  0x44   :  { %889 = vmatprep.subr.bf16.mxu0 %v3835_v40  ;;  %930 = vmatprep.subr.bf16.mxu1 %v3842_v41 }
  0x47   :  { %890 = vmatpush1.bf16.msra.mxu0 %v3847_v42  ;;  %931 = vmatpush1.bf16.msra.mxu1 %v3854_v43 }
  0x48   :  { %891 = vmatprep.subr.bf16.mxu0 %v3859_v44  ;;  %932 = vmatprep.subr.bf16.mxu1 %v3866_v45 }
  0x4b   :  { %892 = vmatpush1.bf16.msra.mxu0 %v3878_v47  ;;  %933 = vmatpush1.bf16.msra.mxu1 %v3883_v48 }
  0x4c   :  { %893 = vmatprep.subr.bf16.mxu0 %v3888_v49  ;;  %934 = vmatprep.subr.bf16.mxu1 %v3893_v50 }
  0x4f   :  { %894 = vmatpush1.bf16.msra.mxu0 %v3902_v51  ;;  %935 = vmatpush1.bf16.msra.mxu1 %v3907_v52 }
  0x50   :  { %1193 = vmatprep.subr.bf16.mxu0 %v3702_v17  ;;  %1234 = vmatprep.subr.bf16.mxu1 %v3707_v18 }
  0xd2   :  { %v3958_v60 = vpop.f32.mrf.mxu0  ;;  %v3960_v61 = vpop.f32.mrf.mxu1 }
  0xd4   :  { %v3964_v0 = vpop.f32.mrf.mxu0  ;;  %v3966_v2 = vpop.f32.mrf.mxu1 }
  0xd6   :  { %v221_v5 = vpop.f32.mrf.mxu0  ;;  %v294_v6 = vpop.f32.mrf.mxu1 }
  0xd7   :  { %v3970_v8 = vadd.f32 %v221_v5, %v53_v3  ;;  %v3973_v9 = vadd.f32 %v294_v6, %v3962_v62 }
  0xd8   :  { %v223_v10 = vpop.f32.mrf.mxu0  ;;  %v296_v11 = vpop.f32.mrf.mxu1 }
  0xd9   :  { %v3975_v12 = vadd.f32 %v223_v10, %v57_v7  ;;  %v3978_v13 = vadd.f32 %v296_v11, %v3968_v4 }
  0xda   :  { %v227_v14 = vpop.f32.mrf.mxu0  ;;  %v300_v15 = vpop.f32.mrf.mxu1 }
  0xdb   :  { %v3980_v16 = vadd.f32 %v227_v14, %v53_v3  ;;  %v3983_v19 = vadd.f32 %v300_v15, %v3962_v62 }
  0xdc   :  { %v229_v28 = vpop.f32.mrf.mxu0  ;;  %v302_v37 = vpop.f32.mrf.mxu1 }
  0xdd   :  { %4503 = vst [vmem:[#allocation5_spill] sm:$0xff] %v3983_v19  ;;  %v3985_v46 = vadd.f32 %v229_v28, %v57_v7  ;;  %v3988_v53 = vadd.f32 %v302_v37, %v3968_v4 }
  0xde   :  { %v231_v54 = vpop.f32.mrf.mxu0  ;;  %v304_v55 = vpop.f32.mrf.mxu1 }
  0xdf   :  { %v3990_v56 = vadd.f32 %v231_v54, %v53_v3  ;;  %v3993_v57 = vadd.f32 %v304_v55, %v3962_v62 }
  0xe0   :  { %v233_v58 = vpop.f32.mrf.mxu0  ;;  %v306_v59 = vpop.f32.mrf.mxu1 }
  0xe1   :  { %4504 = vst [vmem:[#allocation6_spill] sm:$0xff] %v3990_v56  ;;  %4505 = vst [vmem:[#allocation7_spill] sm:$0xff] %v3993_v57  ;;  %v3995_v63 = vadd.f32 %v233_v58, %v57_v7  ;;  %v3998_v5 = vadd.f32 %v306_v59, %v3968_v4 }
  0xe2   :  { %v237_v6 = vpop.f32.mrf.mxu0  ;;  %v310_v10 = vpop.f32.mrf.mxu1 }
  0xe3   :  { %4506 = vst [vmem:[#allocation8_spill] sm:$0xff] %v3995_v63  ;;  %4507 = vst [vmem:[#allocation9_spill] sm:$0xff] %v3998_v5  ;;  %v4000_v11 = vadd.f32 %v237_v6, %v53_v3  ;;  %v4003_v14 = vadd.f32 %v310_v10, %v3962_v62 }
  0xe4   :  { %v239_v15 = vpop.f32.mrf.mxu0  ;;  %v312_v28 = vpop.f32.mrf.mxu1 }
  0xe5   :  { %4508 = vst [vmem:[#allocation10_spill] sm:$0xff] %v4000_v11  ;;  %4509 = vst [vmem:[#allocation11_spill] sm:$0xff] %v4003_v14  ;;  %v4005_v37 = vadd.f32 %v239_v15, %v57_v7  ;;  %v4008_v54 = vadd.f32 %v312_v28, %v3968_v4 }
  0xe6   :  { %v241_v55 = vpop.f32.mrf.mxu0  ;;  %v314_v58 = vpop.f32.mrf.mxu1 }
  0xe7   :  { %4510 = vst [vmem:[#allocation12_spill] sm:$0xff] %v4005_v37  ;;  %4511 = vst [vmem:[#allocation13_spill] sm:$0xff] %v4008_v54  ;;  %v4010_v1 = vadd.f32 %v241_v55, %v53_v3  ;;  %v4013_v59 = vadd.f32 %v314_v58, %v3962_v62 }
  0xe8   :  { %v243_v57 = vpop.f32.mrf.mxu0  ;;  %v316_v6 = vpop.f32.mrf.mxu1 }
  0xe9   :  { %4512 = vst [vmem:[#allocation14_spill] sm:$0xff] %v4010_v1  ;;  %4513 = vst [vmem:[#allocation15_spill] sm:$0xff] %v4013_v59  ;;  %v4015_v11 = vadd.f32 %v243_v57, %v57_v7  ;;  %v4018_v10 = vadd.f32 %v316_v6, %v3968_v4 }
  0xea   :  { %v247_v14 = vpop.f32.mrf.mxu0  ;;  %v320_v15 = vpop.f32.mrf.mxu1 }
  0xeb   :  { %4514 = vst [vmem:[#allocation16_spill] sm:$0xff] %v4015_v11  ;;  %4515 = vst [vmem:[#allocation17_spill] sm:$0xff] %v4018_v10  ;;  %v4020_v37 = vadd.f32 %v247_v14, %v53_v3  ;;  %v4023_v28 = vadd.f32 %v320_v15, %v3962_v62 }
  0xec   :  { %v249_v54 = vpop.f32.mrf.mxu0  ;;  %v322_v55 = vpop.f32.mrf.mxu1 }
  0xed   :  { %4516 = vst [vmem:[#allocation18_spill] sm:$0xff] %v4020_v37  ;;  %4517 = vst [vmem:[#allocation19_spill] sm:$0xff] %v4023_v28  ;;  %v4025_v1 = vadd.f32 %v249_v54, %v57_v7  ;;  %v4028_v58 = vadd.f32 %v322_v55, %v3968_v4  ;;  %v218_v37 = vadd.f32 %v3958_v60, %v53_v3 }
  0xee   :  { %v251_v59 = vpop.f32.mrf.mxu0  ;;  %v324_v57 = vpop.f32.mrf.mxu1  ;;  %v220_v55 = vadd.f32 %v3964_v0, %v57_v7 }
  0xef   :  { %4518 = vst [vmem:[#allocation20_spill] sm:$0xff] %v4025_v1  ;;  %4519 = vst [vmem:[#allocation21_spill] sm:$0xff] %v4028_v58  ;;  %v4030_v11 = vadd.f32 %v251_v59, %v53_v3  ;;  %v4033_v6 = vadd.f32 %v324_v57, %v3962_v62  ;;  %v293_v3 = vadd.f32 %v3966_v2, %v3968_v4 }
  0xf0   :  { %v253_v10 = vpop.f32.mrf.mxu0  ;;  %v326_v14 = vpop.f32.mrf.mxu1 }
  0xf1   :  { %4520 = vst [vmem:[#allocation22_spill] sm:$0xff] %v4030_v11  ;;  %4521 = vst [vmem:[#allocation23_spill] sm:$0xff] %v4033_v6  ;;  %v4036_v15 = vadd.f32 %v253_v10, %v57_v7  ;;  %v4039_v28 = vadd.f32 %v326_v14, %v3968_v4  ;;  %v291_v14 = vadd.f32 %v3960_v61, %v3962_v62 }
  0xf2   :  { %v599_v54 = vpop.f32.mrf.mxu0  ;;  %v640_v1 = vpop.f32.mrf.mxu1 }
  0xf3   :  { %v647_v58 = vadd.f32 %v599_v54, %v218_v37  ;;  %v649_v37 = vadd.f32 %v640_v1, %v291_v14 }
  0xf4   :  { %v601_v5 = vpop.f32.mrf.mxu0  ;;  %v642_v59 = vpop.f32.mrf.mxu1 }
  0xf5   :  { %v3060_v11 = vmul.f32 -1.442695, %v647_v58  ;;  %v648_v63 = vadd.f32 %v601_v5, %v220_v55  ;;  %v650_v10 = vadd.f32 %v642_v59, %v293_v3 }
  0xf6   :  { %v603_v57 = vpop.f32.mrf.mxu0  ;;  %v644_v6 = vpop.f32.mrf.mxu1 }
  0xf7   :  { %3482 = vpow2.f32 %v3060_v11  ;;  %v3061_v56 = vmul.f32 -1.442695, %v648_v63  ;;  %v3062_v0 = vmul.f32 -1.442695, %v650_v10  ;;  %v4522_v57 = vmov 0  }
  0xf8   :  { %v604_v19 = vpop.f32.mrf.mxu0  ;;  %v645_v60 = vpop.f32.mrf.mxu1 }
  0xf9   :  { %3484 = vpow2.f32 %v3061_v56 }
  0xfa   :  { %3486 = vpow2.f32 %v3062_v0 }
 0x104   :  { %v3483_v7 = vpop.eup %3482 }
 0x105   :  { %v654_v54 = vadd.f32 1.0, %v3483_v7 }
 0x106   :  { %v3485_v58 = vpop.eup %3484 }
 0x107   :  { %3488 = vrcp.f32 %v654_v54  ;;  %v660_v5 = vadd.f32 1.0, %v3485_v58  ;;  %v3487_v19 = vpop.eup %3486 }
 0x108   :  { %3490 = vtanh.f32 %v649_v37  ;;  %v667_v6 = vadd.f32 1.0, %v3487_v19 }
 0x109   :  { %3492 = vrcp.f32 %v660_v5 }
 0x10a   :  { %3494 = vrcp.f32 %v667_v6 }
 0x114   :  { %v3489_v63 = vpop.eup %3488 }
 0x115   :  { %v3491_v56 = vpop.eup %3490 }
 0x116   :  { %v3493_v11 = vpop.eup %3492  ;;  %v671_v4 = vmul.f32 %v3491_v56, %v3489_v63 }
 0x117   :  { %v670_v2 = vmul.f32 0.0, %v3493_v11  ;;  %v3495_v1 = vpop.eup %3494 }
 0x119   :  { %v4046_v55 = vadd.f32 %v671_v4, %v670_v2 }
 0x11b   :  { %3496 = vtanh.f32 %v4046_v55 }
 0x128   :  { %v3497_v61 = vpop.eup %3496 }
 0x129   :  { %v674_v62 = vmul.f32 %v3497_v61, %v3495_v1 }
 0x12b   :  { %v686_v59 = vpack.c.bf16 %v674_v62, %v674_v62 }
 0x12d   :  { %912 = vmatmul.mubr.bf16.vlgmr.msra.gmra.mxu0 %v686_v59  ;;  %953 = vmatmul.mubr.bf16.vlgmr.msra.gmra.mxu1 %v686_v59 }
 0x12e   :  { %1194 = vmatpush1.bf16.msra.mxu0 %v3715_v20  ;;  %1235 = vmatpush1.bf16.msra.mxu1 %v3720_v21 }
 0x12f   :  { %1195 = vmatprep.subr.bf16.mxu0 %v3725_v22  ;;  %1236 = vmatprep.subr.bf16.mxu1 %v3732_v23 }
 0x130   :  { %1225 = vmatprep.mubr.bf16.mxu0 %v4522_v57  ;;  %1266 = vmatprep.mubr.bf16.mxu1 %v4522_v57 }
 0x132   :  { %1196 = vmatpush1.bf16.msra.mxu0 %v3741_v24  ;;  %1237 = vmatpush1.bf16.msra.mxu1 %v3746_v25 }
 0x133   :  { %1197 = vmatprep.subr.bf16.mxu0 %v3753_v26  ;;  %1238 = vmatprep.subr.bf16.mxu1 %v3758_v27 }
 0x136   :  { %1198 = vmatpush1.bf16.msra.mxu0 %v3768_v29  ;;  %1239 = vmatpush1.bf16.msra.mxu1 %v3775_v30 }
 0x137   :  { %1199 = vmatprep.subr.bf16.mxu0 %v3782_v31  ;;  %1240 = vmatprep.subr.bf16.mxu1 %v3787_v32 }
 0x13a   :  { %1200 = vmatpush1.bf16.msra.mxu0 %v3794_v33  ;;  %1241 = vmatpush1.bf16.msra.mxu1 %v3801_v34 }
 0x13b   :  { %1201 = vmatprep.subr.bf16.mxu0 %v3808_v35  ;;  %1242 = vmatprep.subr.bf16.mxu1 %v3813_v36 }
 0x13e   :  { %1202 = vmatpush1.bf16.msra.mxu0 %v3823_v38  ;;  %1243 = vmatpush1.bf16.msra.mxu1 %v3828_v39 }
 0x13f   :  { %1203 = vmatprep.subr.bf16.mxu0 %v3835_v40  ;;  %1244 = vmatprep.subr.bf16.mxu1 %v3842_v41 }
 0x142   :  { %1204 = vmatpush1.bf16.msra.mxu0 %v3847_v42  ;;  %1245 = vmatpush1.bf16.msra.mxu1 %v3854_v43 }
 0x143   :  { %1205 = vmatprep.subr.bf16.mxu0 %v3859_v44  ;;  %1246 = vmatprep.subr.bf16.mxu1 %v3866_v45 }
 0x146   :  { %1206 = vmatpush1.bf16.msra.mxu0 %v3878_v47  ;;  %1247 = vmatpush1.bf16.msra.mxu1 %v3883_v48 }
 0x147   :  { %1207 = vmatprep.subr.bf16.mxu0 %v3888_v49  ;;  %1248 = vmatprep.subr.bf16.mxu1 %v3893_v50 }
 0x14a   :  { %1208 = vmatpush1.bf16.msra.mxu0 %v3902_v51  ;;  %1249 = vmatpush1.bf16.msra.mxu1 %v3907_v52 }
 0x14b   :  { %1507 = vmatprep.subr.bf16.mxu0 %v3702_v17  ;;  %1548 = vmatprep.subr.bf16.mxu1 %v3707_v18 }
 0x1ed   :  { %v913_v60 = vpop.f32.mrf.mxu0  ;;  %v954_v3 = vpop.f32.mrf.mxu1 }
 0x1ee   :  { %v961_v10 = vadd.f32 %v913_v60, %v3970_v8  ;;  %v963_v18 = vadd.f32 %v954_v3, %v3973_v9 }
 0x1ef   :  { %v915_v14 = vpop.f32.mrf.mxu0  ;;  %v956_v0 = vpop.f32.mrf.mxu1 }
 0x1f0   :  { %v3095_v7 = vmul.f32 -1.442695, %v961_v10  ;;  %v962_v37 = vadd.f32 %v915_v14, %v3975_v12  ;;  %v964_v17 = vadd.f32 %v956_v0, %v3978_v13  ;;  %v4146_v0 = vld [vmem:[%s4496_s2 + $0xe0] ss:$16 sps:$4 sm:$0xff]  }
 0x1f1   :  { %v917_v54 = vpop.f32.mrf.mxu0  ;;  %v958_v58 = vpop.f32.mrf.mxu1 }
 0x1f2   :  { %3498 = vpow2.f32 %v3095_v7  ;;  %v3096_v5 = vmul.f32 -1.442695, %v962_v37  ;;  %v3097_v56 = vmul.f32 -1.442695, %v964_v17  ;;  %v4151_v7 = vld [vmem:[%s4496_s2 + $0xe8] ss:$16 sps:$4 sm:$0xff]  }
 0x1f3   :  { %v918_v19 = vpop.f32.mrf.mxu0  ;;  %v959_v63 = vpop.f32.mrf.mxu1  ;;  %v4160_v37 = vld [vmem:[%s4496_s2 + $0xc4] ss:$16 sps:$4 sm:$0xff]   ;;  %v4165_v54 = vld [vmem:[%s4496_s2 + $0xcc] ss:$16 sps:$4 sm:$0xff]   ;;  %v4170_v58 = vld [vmem:[%s4496_s2 + $0xc0] ss:$16 sps:$4 sm:$0xff]  }
 0x1f4   :  { %3500 = vpow2.f32 %v3096_v5  ;;  %v4175_v5 = vld [vmem:[%s4496_s2 + $0xc8] ss:$16 sps:$4 sm:$0xff]   ;;  %v4184_v19 = vld [vmem:[%s4496_s2 + $0xa4] ss:$16 sps:$4 sm:$0xff]   ;;  %v4189_v63 = vld [vmem:[%s4496_s2 + $0xac] ss:$16 sps:$4 sm:$0xff]  }
 0x1f5   :  { %3502 = vtanh.f32 %v963_v18  ;;  %v4194_v17 = vld [vmem:[%s4496_s2 + $0xa0] ss:$16 sps:$4 sm:$0xff]   ;;  %v4199_v18 = vld [vmem:[%s4496_s2 + $0xa8] ss:$16 sps:$4 sm:$0xff]  }
 0x1f6   :  { %3504 = vpow2.f32 %v3097_v56  ;;  %v4208_v56 = vld [vmem:[%s4496_s2 + $0x84] ss:$16 sps:$4 sm:$0xff]  }
 0x1ff   :  { %v3499_v11 = vpop.eup %3498 }
 0x200   :  { %v968_v6 = vadd.f32 1.0, %v3499_v11  ;;  %v4213_v11 = vld [vmem:[%s4496_s2 + $0x8c] ss:$16 sps:$4 sm:$0xff]  }
 0x201   :  { %v3501_v8 = vpop.eup %3500 }
 0x202   :  { %3506 = vrcp.f32 %v968_v6  ;;  %v974_v2 = vadd.f32 1.0, %v3501_v8  ;;  %v3503_v12 = vpop.eup %3502  ;;  %v4218_v6 = vld [vmem:[%s4496_s2 + $0x80] ss:$16 sps:$4 sm:$0xff]   ;;  %v4223_v8 = vld [vmem:[%s4496_s2 + $0x88] ss:$16 sps:$4 sm:$0xff]  }
 0x203   :  { %v3505_v4 = vpop.eup %3504 }
 0x204   :  { %3508 = vrcp.f32 %v974_v2  ;;  %v981_v59 = vadd.f32 1.0, %v3505_v4  ;;  %v4230_v2 = vld [vmem:[%s4496_s2 + $0x64] ss:$16 sps:$4 sm:$0xff]   ;;  %v4242_v4 = vld [vmem:[%s4496_s2 + $0x60] ss:$16 sps:$4 sm:$0xff]  }
 0x206   :  { %3510 = vrcp.f32 %v981_v59  ;;  %v4266_v59 = vld [vmem:[%s4496_s2 + $0x40] ss:$16 sps:$4 sm:$0xff]  }
 0x20f   :  { %v3507_v1 = vpop.eup %3506 }
 0x210   :  { %v985_v61 = vmul.f32 %v3507_v1, %v3503_v12  ;;  %v4235_v12 = vld [vmem:[%s4496_s2 + $0x6c] ss:$16 sps:$4 sm:$0xff]   ;;  %v4247_v1 = vld [vmem:[%s4496_s2 + $0x68] ss:$16 sps:$4 sm:$0xff]  }
 0x211   :  { %v3509_v62 = vpop.eup %3508 }
 0x212   :  { %v984_v60 = vmul.f32 %v3509_v62, %v4046_v55  ;;  %v4141_v55 = vld [vmem:[%s4496_s2 + $0xec] ss:$16 sps:$4 sm:$0xff]  }
 0x213   :  { %v3511_v9 = vpop.eup %3510  ;;  %v4259_v62 = vld [vmem:[%s4496_s2 + $0x4c] ss:$16 sps:$4 sm:$0xff]  }
 0x214   :  { %v4088_v13 = vadd.f32 %v985_v61, %v984_v60  ;;  %v4254_v61 = vld [vmem:[%s4496_s2 + $0x44] ss:$16 sps:$4 sm:$0xff]   ;;  %v4271_v60 = vld [vmem:[%s4496_s2 + $0x48] ss:$16 sps:$4 sm:$0xff]  }
 0x216   :  { %3512 = vtanh.f32 %v4088_v13 }
 0x223   :  { %v3513_v3 = vpop.eup %3512 }
 0x224   :  { %v988_v10 = vmul.f32 %v3513_v3, %v3511_v9  ;;  %v4283_v9 = vld [vmem:[%s4496_s2 + $0x2c] ss:$16 sps:$4 sm:$0xff]   ;;  %v4290_v3 = vld [vmem:[%s4496_s2 + $0x20] ss:$16 sps:$4 sm:$0xff]  }
 0x226   :  { %v1000_v14 = vpack.c.bf16 %v988_v10, %v988_v10  ;;  %v4295_v10 = vld [vmem:[%s4496_s2 + $0x28] ss:$16 sps:$4 sm:$0xff]  }
 0x228   :  { %1226 = vmatmul.mubr.bf16.vlgmr.msra.gmra.mxu0 %v1000_v14  ;;  %1267 = vmatmul.mubr.bf16.vlgmr.msra.gmra.mxu1 %v1000_v14  ;;  %v4302_v14 = vld [vmem:[%s4496_s2 + $0x4] ss:$16 sps:$4 sm:$0xff]  }
 0x229   :  { %1508 = vmatpush1.bf16.msra.mxu0 %v3715_v20  ;;  %1549 = vmatpush1.bf16.msra.mxu1 %v3720_v21 }
 0x22a   :  { %1509 = vmatprep.subr.bf16.mxu0 %v3725_v22  ;;  %1550 = vmatprep.subr.bf16.mxu1 %v3732_v23 }
 0x22b   :  { %1539 = vmatprep.mubr.bf16.mxu0 %v4522_v57  ;;  %1580 = vmatprep.mubr.bf16.mxu1 %v4522_v57 }
 0x22d   :  { %1510 = vmatpush1.bf16.msra.mxu0 %v3741_v24  ;;  %1551 = vmatpush1.bf16.msra.mxu1 %v3746_v25 }
 0x22e   :  { %1511 = vmatprep.subr.bf16.mxu0 %v3753_v26  ;;  %1552 = vmatprep.subr.bf16.mxu1 %v3758_v27 }
 0x231   :  { %1512 = vmatpush1.bf16.msra.mxu0 %v3768_v29  ;;  %1553 = vmatpush1.bf16.msra.mxu1 %v3775_v30 }
 0x232   :  { %1513 = vmatprep.subr.bf16.mxu0 %v3782_v31  ;;  %1554 = vmatprep.subr.bf16.mxu1 %v3787_v32 }
 0x235   :  { %1514 = vmatpush1.bf16.msra.mxu0 %v3794_v33  ;;  %1555 = vmatpush1.bf16.msra.mxu1 %v3801_v34  ;;  %v4523_v34 = vld [vmem:[#allocation5_spill] sm:$0xff] }
 0x236   :  { %1515 = vmatprep.subr.bf16.mxu0 %v3808_v35  ;;  %1556 = vmatprep.subr.bf16.mxu1 %v3813_v36 }
 0x239   :  { %1516 = vmatpush1.bf16.msra.mxu0 %v3823_v38  ;;  %1557 = vmatpush1.bf16.msra.mxu1 %v3828_v39 }
 0x23a   :  { %1517 = vmatprep.subr.bf16.mxu0 %v3835_v40  ;;  %1558 = vmatprep.subr.bf16.mxu1 %v3842_v41 }
 0x23d   :  { %1518 = vmatpush1.bf16.msra.mxu0 %v3847_v42  ;;  %1559 = vmatpush1.bf16.msra.mxu1 %v3854_v43 }
 0x23e   :  { %1519 = vmatprep.subr.bf16.mxu0 %v3859_v44  ;;  %1560 = vmatprep.subr.bf16.mxu1 %v3866_v45 }
 0x241   :  { %1520 = vmatpush1.bf16.msra.mxu0 %v3878_v47  ;;  %1561 = vmatpush1.bf16.msra.mxu1 %v3883_v48 }
 0x242   :  { %1521 = vmatprep.subr.bf16.mxu0 %v3888_v49  ;;  %1562 = vmatprep.subr.bf16.mxu1 %v3893_v50 }
 0x245   :  { %1522 = vmatpush1.bf16.msra.mxu0 %v3902_v51  ;;  %1563 = vmatpush1.bf16.msra.mxu1 %v3907_v52 }
 0x246   :  { %1862 = vmatprep.subr.bf16.mxu1 %v4141_v55 }
 0x2e8   :  { %v1227_v20 = vpop.f32.mrf.mxu0  ;;  %v1268_v21 = vpop.f32.mrf.mxu1 }
 0x2e9   :  { %v1275_v22 = vadd.f32 %v1227_v20, %v3980_v16  ;;  %v1277_v35 = vadd.f32 %v1268_v21, %v4523_v34  ;;  %v4307_v20 = vld [vmem:[%s4496_s2 + $0xc] ss:$16 sps:$4 sm:$0xff]   ;;  %v4314_v21 = vld [vmem:[%s4496_s2] ss:$16 sps:$4 sm:$0xff]  }
 0x2ea   :  { %v1229_v23 = vpop.f32.mrf.mxu0  ;;  %v1270_v24 = vpop.f32.mrf.mxu1 }
 0x2eb   :  { %v3130_v25 = vmul.f32 -1.442695, %v1275_v22  ;;  %v1276_v26 = vadd.f32 %v1229_v23, %v3985_v46  ;;  %v1278_v33 = vadd.f32 %v1270_v24, %v3988_v53  ;;  %v4136_v53 = vld [vmem:[%s4496_s2 + $0xe4] ss:$16 sps:$4 sm:$0xff]   ;;  %v4319_v22 = vld [vmem:[%s4496_s2 + $0x8] ss:$16 sps:$4 sm:$0xff]  }
 0x2ec   :  { %v1231_v27 = vpop.f32.mrf.mxu0  ;;  %v1272_v29 = vpop.f32.mrf.mxu1  ;;  %1821 = vmatprep.subr.bf16.mxu0 %v4136_v53 }
 0x2ed   :  { %3514 = vpow2.f32 %v3130_v25  ;;  %v3131_v30 = vmul.f32 -1.442695, %v1276_v26  ;;  %v3132_v36 = vmul.f32 -1.442695, %v1278_v33  ;;  %v4524_v25 = vld [vmem:[#allocation6_spill] sm:$0xff] }
 0x2ee   :  { %v1232_v31 = vpop.f32.mrf.mxu0  ;;  %v1273_v32 = vpop.f32.mrf.mxu1 }
 0x2ef   :  { %3516 = vpow2.f32 %v3131_v30  ;;  %v4525_v31 = vld [vmem:[#allocation8_spill] sm:$0xff] }
 0x2f0   :  { %3518 = vtanh.f32 %v1277_v35 }
 0x2f1   :  { %3520 = vpow2.f32 %v3132_v36 }
 0x2fa   :  { %v3515_v38 = vpop.eup %3514 }
 0x2fb   :  { %v1282_v39 = vadd.f32 1.0, %v3515_v38 }
 0x2fc   :  { %v3517_v40 = vpop.eup %3516 }
 0x2fd   :  { %3522 = vrcp.f32 %v1282_v39  ;;  %v1288_v41 = vadd.f32 1.0, %v3517_v40  ;;  %v3519_v42 = vpop.eup %3518  ;;  %v4526_v39 = vld [vmem:[#allocation9_spill] sm:$0xff] }
 0x2fe   :  { %v3521_v43 = vpop.eup %3520 }
 0x2ff   :  { %3524 = vrcp.f32 %v1288_v41  ;;  %v1295_v48 = vadd.f32 1.0, %v3521_v43  ;;  %v4527_v41 = vld [vmem:[#allocation7_spill] sm:$0xff] }
 0x301   :  { %3526 = vrcp.f32 %v1295_v48 }
 0x30a   :  { %v3523_v44 = vpop.eup %3522 }
 0x30b   :  { %v1299_v45 = vmul.f32 %v3523_v44, %v3519_v42 }
 0x30c   :  { %v3525_v47 = vpop.eup %3524 }
 0x30d   :  { %v1298_v49 = vmul.f32 %v3525_v47, %v4088_v13  ;;  %v4278_v13 = vld [vmem:[%s4496_s2 + $0x24] ss:$16 sps:$4 sm:$0xff]  }
 0x30e   :  { %v3527_v51 = vpop.eup %3526 }
 0x30f   :  { %v4128_v50 = vadd.f32 %v1299_v45, %v1298_v49 }
 0x311   :  { %3528 = vtanh.f32 %v4128_v50 }
 0x31e   :  { %v3529_v52 = vpop.eup %3528 }
 0x31f   :  { %v1302_v16 = vmul.f32 %v3529_v52, %v3527_v51 }
 0x321   :  { %v1314_v46 = vpack.c.bf16 %v1302_v16, %v1302_v16 }
 0x323   :  { %1540 = vmatmul.mubr.bf16.vlgmr.msra.gmra.mxu0 %v1314_v46  ;;  %1581 = vmatmul.mubr.bf16.vlgmr.msra.gmra.mxu1 %v1314_v46 }
 0x324   :  { %1853 = vmatprep.mubr.bf16.mxu0 %v4522_v57  ;;  %1894 = vmatprep.mubr.bf16.mxu1 %v4522_v57 }
 0x325   :  { %1822 = vmatpush1.bf16.msra.mxu0 %v4146_v0  ;;  %1863 = vmatpush1.bf16.msra.mxu1 %v4151_v7 }
 0x326   :  { %1823 = vmatprep.subr.bf16.mxu0 %v4160_v37  ;;  %1864 = vmatprep.subr.bf16.mxu1 %v4165_v54 }
 0x329   :  { %1824 = vmatpush1.bf16.msra.mxu0 %v4170_v58  ;;  %1865 = vmatpush1.bf16.msra.mxu1 %v4175_v5 }
 0x32a   :  { %1825 = vmatprep.subr.bf16.mxu0 %v4184_v19  ;;  %1866 = vmatprep.subr.bf16.mxu1 %v4189_v63 }
 0x32d   :  { %1826 = vmatpush1.bf16.msra.mxu0 %v4194_v17  ;;  %1867 = vmatpush1.bf16.msra.mxu1 %v4199_v18 }
 0x32e   :  { %1827 = vmatprep.subr.bf16.mxu0 %v4208_v56  ;;  %1868 = vmatprep.subr.bf16.mxu1 %v4213_v11 }
 0x331   :  { %1828 = vmatpush1.bf16.msra.mxu0 %v4218_v6  ;;  %1869 = vmatpush1.bf16.msra.mxu1 %v4223_v8 }
 0x332   :  { %1829 = vmatprep.subr.bf16.mxu0 %v4230_v2  ;;  %1870 = vmatprep.subr.bf16.mxu1 %v4235_v12 }
 0x335   :  { %1830 = vmatpush1.bf16.msra.mxu0 %v4242_v4  ;;  %1871 = vmatpush1.bf16.msra.mxu1 %v4247_v1 }
 0x336   :  { %1831 = vmatprep.subr.bf16.mxu0 %v4254_v61  ;;  %1872 = vmatprep.subr.bf16.mxu1 %v4259_v62 }
 0x339   :  { %1832 = vmatpush1.bf16.msra.mxu0 %v4266_v59  ;;  %1873 = vmatpush1.bf16.msra.mxu1 %v4271_v60 }
 0x33a   :  { %1833 = vmatprep.subr.bf16.mxu0 %v4278_v13  ;;  %1874 = vmatprep.subr.bf16.mxu1 %v4283_v9 }
 0x33d   :  { %1834 = vmatpush1.bf16.msra.mxu0 %v4290_v3  ;;  %1875 = vmatpush1.bf16.msra.mxu1 %v4295_v10 }
 0x33e   :  { %1835 = vmatprep.subr.bf16.mxu0 %v4302_v14  ;;  %1876 = vmatprep.subr.bf16.mxu1 %v4307_v20 }
 0x341   :  { %1836 = vmatpush1.bf16.msra.mxu0 %v4314_v21  ;;  %1877 = vmatpush1.bf16.msra.mxu1 %v4319_v22 }
 0x342   :  { %2135 = vmatprep.subr.bf16.mxu0 %v4136_v53  ;;  %2176 = vmatprep.subr.bf16.mxu1 %v4141_v55 }
 0x3e3   :  { %v1541_v23 = vpop.f32.mrf.mxu0  ;;  %v1582_v24 = vpop.f32.mrf.mxu1 }
 0x3e4   :  { %v1589_v26 = vadd.f32 %v1541_v23, %v4524_v25  ;;  %v1591_v42 = vadd.f32 %v1582_v24, %v4527_v41 }
 0x3e5   :  { %v1543_v27 = vpop.f32.mrf.mxu0  ;;  %v1584_v29 = vpop.f32.mrf.mxu1 }
 0x3e6   :  { %v3165_v30 = vmul.f32 -1.442695, %v1589_v26  ;;  %v1590_v32 = vadd.f32 %v1543_v27, %v4525_v31  ;;  %v1592_v40 = vadd.f32 %v1584_v29, %v4526_v39 }
 0x3e7   :  { %v1545_v33 = vpop.f32.mrf.mxu0  ;;  %v1586_v34 = vpop.f32.mrf.mxu1 }
 0x3e8   :  { %3530 = vpow2.f32 %v3165_v30  ;;  %v3166_v35 = vmul.f32 -1.442695, %v1590_v32  ;;  %v3167_v43 = vmul.f32 -1.442695, %v1592_v40  ;;  %v4528_v32 = vld [vmem:[#allocation10_spill] sm:$0xff] }
 0x3e9   :  { %v1546_v36 = vpop.f32.mrf.mxu0  ;;  %v1587_v38 = vpop.f32.mrf.mxu1 }
 0x3ea   :  { %3532 = vpow2.f32 %v3166_v35  ;;  %v4529_v38 = vld [vmem:[#allocation12_spill] sm:$0xff] }
 0x3eb   :  { %3534 = vtanh.f32 %v1591_v42 }
 0x3ec   :  { %3536 = vpow2.f32 %v3167_v43 }
 0x3f5   :  { %v3531_v44 = vpop.eup %3530 }
 0x3f6   :  { %v1596_v45 = vadd.f32 1.0, %v3531_v44 }
 0x3f7   :  { %v3533_v47 = vpop.eup %3532 }
 0x3f8   :  { %3538 = vrcp.f32 %v1596_v45  ;;  %v1602_v48 = vadd.f32 1.0, %v3533_v47  ;;  %v3535_v49 = vpop.eup %3534  ;;  %v4530_v45 = vld [vmem:[#allocation13_spill] sm:$0xff] }
 0x3f9   :  { %v3537_v51 = vpop.eup %3536 }
 0x3fa   :  { %3540 = vrcp.f32 %v1602_v48  ;;  %v1609_v23 = vadd.f32 1.0, %v3537_v51  ;;  %v4531_v48 = vld [vmem:[#allocation11_spill] sm:$0xff] }
 0x3fc   :  { %3542 = vrcp.f32 %v1609_v23 }
 0x405   :  { %v3539_v52 = vpop.eup %3538 }
 0x406   :  { %v1613_v16 = vmul.f32 %v3539_v52, %v3535_v49 }
 0x407   :  { %v3541_v46 = vpop.eup %3540 }
 0x408   :  { %v1612_v25 = vmul.f32 %v3541_v46, %v4128_v50 }
 0x409   :  { %v3543_v24 = vpop.eup %3542 }
 0x40a   :  { %v4332_v26 = vadd.f32 %v1613_v16, %v1612_v25 }
 0x40c   :  { %3544 = vtanh.f32 %v4332_v26 }
 0x419   :  { %v3545_v27 = vpop.eup %3544 }
 0x41a   :  { %v1616_v29 = vmul.f32 %v3545_v27, %v3543_v24 }
 0x41c   :  { %v1628_v30 = vpack.c.bf16 %v1616_v29, %v1616_v29 }
 0x41e   :  { %1854 = vmatmul.mubr.bf16.vlgmr.msra.gmra.mxu0 %v1628_v30  ;;  %1895 = vmatmul.mubr.bf16.vlgmr.msra.gmra.mxu1 %v1628_v30 }
 0x41f   :  { %2136 = vmatpush1.bf16.msra.mxu0 %v4146_v0  ;;  %2177 = vmatpush1.bf16.msra.mxu1 %v4151_v7 }
 0x420   :  { %2137 = vmatprep.subr.bf16.mxu0 %v4160_v37  ;;  %2178 = vmatprep.subr.bf16.mxu1 %v4165_v54 }
 0x421   :  { %2167 = vmatprep.mubr.bf16.mxu0 %v4522_v57  ;;  %2208 = vmatprep.mubr.bf16.mxu1 %v4522_v57 }
 0x423   :  { %2138 = vmatpush1.bf16.msra.mxu0 %v4170_v58  ;;  %2179 = vmatpush1.bf16.msra.mxu1 %v4175_v5 }
 0x424   :  { %2139 = vmatprep.subr.bf16.mxu0 %v4184_v19  ;;  %2180 = vmatprep.subr.bf16.mxu1 %v4189_v63 }
 0x427   :  { %2140 = vmatpush1.bf16.msra.mxu0 %v4194_v17  ;;  %2181 = vmatpush1.bf16.msra.mxu1 %v4199_v18 }
 0x428   :  { %2141 = vmatprep.subr.bf16.mxu0 %v4208_v56  ;;  %2182 = vmatprep.subr.bf16.mxu1 %v4213_v11 }
 0x42b   :  { %2142 = vmatpush1.bf16.msra.mxu0 %v4218_v6  ;;  %2183 = vmatpush1.bf16.msra.mxu1 %v4223_v8 }
 0x42c   :  { %2143 = vmatprep.subr.bf16.mxu0 %v4230_v2  ;;  %2184 = vmatprep.subr.bf16.mxu1 %v4235_v12 }
 0x42f   :  { %2144 = vmatpush1.bf16.msra.mxu0 %v4242_v4  ;;  %2185 = vmatpush1.bf16.msra.mxu1 %v4247_v1 }
 0x430   :  { %2145 = vmatprep.subr.bf16.mxu0 %v4254_v61  ;;  %2186 = vmatprep.subr.bf16.mxu1 %v4259_v62 }
 0x433   :  { %2146 = vmatpush1.bf16.msra.mxu0 %v4266_v59  ;;  %2187 = vmatpush1.bf16.msra.mxu1 %v4271_v60 }
 0x434   :  { %2147 = vmatprep.subr.bf16.mxu0 %v4278_v13  ;;  %2188 = vmatprep.subr.bf16.mxu1 %v4283_v9 }
 0x437   :  { %2148 = vmatpush1.bf16.msra.mxu0 %v4290_v3  ;;  %2189 = vmatpush1.bf16.msra.mxu1 %v4295_v10 }
 0x438   :  { %2149 = vmatprep.subr.bf16.mxu0 %v4302_v14  ;;  %2190 = vmatprep.subr.bf16.mxu1 %v4307_v20 }
 0x43b   :  { %2150 = vmatpush1.bf16.msra.mxu0 %v4314_v21  ;;  %2191 = vmatpush1.bf16.msra.mxu1 %v4319_v22 }
 0x43c   :  { %2449 = vmatprep.subr.bf16.mxu0 %v4136_v53  ;;  %2490 = vmatprep.subr.bf16.mxu1 %v4141_v55 }
 0x4de   :  { %v1855_v50 = vpop.f32.mrf.mxu0  ;;  %v1896_v31 = vpop.f32.mrf.mxu1 }
 0x4df   :  { %v1903_v33 = vadd.f32 %v1855_v50, %v4528_v32  ;;  %v1905_v49 = vadd.f32 %v1896_v31, %v4531_v48 }
 0x4e0   :  { %v1857_v34 = vpop.f32.mrf.mxu0  ;;  %v1898_v35 = vpop.f32.mrf.mxu1 }
 0x4e1   :  { %v3200_v36 = vmul.f32 -1.442695, %v1903_v33  ;;  %v1904_v39 = vadd.f32 %v1857_v34, %v4529_v38  ;;  %v1906_v47 = vadd.f32 %v1898_v35, %v4530_v45 }
 0x4e2   :  { %v1859_v40 = vpop.f32.mrf.mxu0  ;;  %v1900_v41 = vpop.f32.mrf.mxu1 }
 0x4e3   :  { %3546 = vpow2.f32 %v3200_v36  ;;  %v3201_v42 = vmul.f32 -1.442695, %v1904_v39  ;;  %v3202_v51 = vmul.f32 -1.442695, %v1906_v47  ;;  %v4532_v39 = vld [vmem:[#allocation14_spill] sm:$0xff] }
 0x4e4   :  { %v1860_v43 = vpop.f32.mrf.mxu0  ;;  %v1901_v44 = vpop.f32.mrf.mxu1 }
 0x4e5   :  { %3548 = vpow2.f32 %v3201_v42  ;;  %v4533_v44 = vld [vmem:[#allocation16_spill] sm:$0xff] }
 0x4e6   :  { %3550 = vtanh.f32 %v1905_v49 }
 0x4e7   :  { %3552 = vpow2.f32 %v3202_v51 }
 0x4f0   :  { %v3547_v52 = vpop.eup %3546 }
 0x4f1   :  { %v1910_v16 = vadd.f32 1.0, %v3547_v52 }
 0x4f2   :  { %v3549_v46 = vpop.eup %3548 }
 0x4f3   :  { %3554 = vrcp.f32 %v1910_v16  ;;  %v1916_v23 = vadd.f32 1.0, %v3549_v46  ;;  %v3551_v25 = vpop.eup %3550  ;;  %v4534_v16 = vld [vmem:[#allocation17_spill] sm:$0xff]  ;;  %v4535_v46 = vld [vmem:[#allocation15_spill] sm:$0xff] }
 0x4f4   :  { %v3553_v24 = vpop.eup %3552 }
 0x4f5   :  { %3556 = vrcp.f32 %v1916_v23  ;;  %v1923_v50 = vadd.f32 1.0, %v3553_v24 }
 0x4f7   :  { %3558 = vrcp.f32 %v1923_v50 }
 0x500   :  { %v3555_v27 = vpop.eup %3554 }
 0x501   :  { %v1927_v29 = vmul.f32 %v3555_v27, %v3551_v25 }
 0x502   :  { %v3557_v30 = vpop.eup %3556 }
 0x503   :  { %v1926_v32 = vmul.f32 %v3557_v30, %v4332_v26 }
 0x504   :  { %v3559_v31 = vpop.eup %3558 }
 0x505   :  { %v4374_v33 = vadd.f32 %v1927_v29, %v1926_v32 }
 0x507   :  { %3560 = vtanh.f32 %v4374_v33 }
 0x514   :  { %v3561_v34 = vpop.eup %3560 }
 0x515   :  { %v1930_v35 = vmul.f32 %v3561_v34, %v3559_v31 }
 0x517   :  { %v1942_v36 = vpack.c.bf16 %v1930_v35, %v1930_v35 }
 0x519   :  { %2168 = vmatmul.mubr.bf16.vlgmr.msra.gmra.mxu0 %v1942_v36  ;;  %2209 = vmatmul.mubr.bf16.vlgmr.msra.gmra.mxu1 %v1942_v36 }
 0x51a   :  { %2450 = vmatpush1.bf16.msra.mxu0 %v4146_v0  ;;  %2491 = vmatpush1.bf16.msra.mxu1 %v4151_v7 }
 0x51b   :  { %2451 = vmatprep.subr.bf16.mxu0 %v4160_v37  ;;  %2492 = vmatprep.subr.bf16.mxu1 %v4165_v54 }
 0x51c   :  { %2481 = vmatprep.mubr.bf16.mxu0 %v4522_v57  ;;  %2522 = vmatprep.mubr.bf16.mxu1 %v4522_v57 }
 0x51e   :  { %2452 = vmatpush1.bf16.msra.mxu0 %v4170_v58  ;;  %2493 = vmatpush1.bf16.msra.mxu1 %v4175_v5 }
 0x51f   :  { %2453 = vmatprep.subr.bf16.mxu0 %v4184_v19  ;;  %2494 = vmatprep.subr.bf16.mxu1 %v4189_v63 }
 0x522   :  { %2454 = vmatpush1.bf16.msra.mxu0 %v4194_v17  ;;  %2495 = vmatpush1.bf16.msra.mxu1 %v4199_v18 }
 0x523   :  { %2455 = vmatprep.subr.bf16.mxu0 %v4208_v56  ;;  %2496 = vmatprep.subr.bf16.mxu1 %v4213_v11 }
 0x526   :  { %2456 = vmatpush1.bf16.msra.mxu0 %v4218_v6  ;;  %2497 = vmatpush1.bf16.msra.mxu1 %v4223_v8 }
 0x527   :  { %2457 = vmatprep.subr.bf16.mxu0 %v4230_v2  ;;  %2498 = vmatprep.subr.bf16.mxu1 %v4235_v12 }
 0x52a   :  { %2458 = vmatpush1.bf16.msra.mxu0 %v4242_v4  ;;  %2499 = vmatpush1.bf16.msra.mxu1 %v4247_v1 }
 0x52b   :  { %2459 = vmatprep.subr.bf16.mxu0 %v4254_v61  ;;  %2500 = vmatprep.subr.bf16.mxu1 %v4259_v62 }
 0x52e   :  { %2460 = vmatpush1.bf16.msra.mxu0 %v4266_v59  ;;  %2501 = vmatpush1.bf16.msra.mxu1 %v4271_v60 }
 0x52f   :  { %2461 = vmatprep.subr.bf16.mxu0 %v4278_v13  ;;  %2502 = vmatprep.subr.bf16.mxu1 %v4283_v9 }
 0x532   :  { %2462 = vmatpush1.bf16.msra.mxu0 %v4290_v3  ;;  %2503 = vmatpush1.bf16.msra.mxu1 %v4295_v10 }
 0x533   :  { %2463 = vmatprep.subr.bf16.mxu0 %v4302_v14  ;;  %2504 = vmatprep.subr.bf16.mxu1 %v4307_v20 }
 0x536   :  { %2464 = vmatpush1.bf16.msra.mxu0 %v4314_v21  ;;  %2505 = vmatpush1.bf16.msra.mxu1 %v4319_v22 }
 0x537   :  { %2763 = vmatprep.subr.bf16.mxu0 %v4136_v53  ;;  %2804 = vmatprep.subr.bf16.mxu1 %v4141_v55 }
 0x5d9   :  { %v2169_v26 = vpop.f32.mrf.mxu0  ;;  %v2210_v38 = vpop.f32.mrf.mxu1 }
 0x5da   :  { %v2217_v40 = vadd.f32 %v2169_v26, %v4532_v39  ;;  %v2219_v55 = vadd.f32 %v2210_v38, %v4535_v46  ;;  %v3481_v46 = vld [vmem:[%s4498_s4] sm:$0xff]  }
 0x5db   :  { %v2171_v41 = vpop.f32.mrf.mxu0  ;;  %v2212_v42 = vpop.f32.mrf.mxu1 }
 0x5dc   :  { %v3235_v43 = vmul.f32 -1.442695, %v2217_v40  ;;  %v2218_v45 = vadd.f32 %v2171_v41, %v4533_v44  ;;  %v2220_v53 = vadd.f32 %v2212_v42, %v4534_v16  ;;  %v3479_v16 = vld [vmem:[%s4498_s4 + $0x10] sm:$0xff]  }
 0x5dd   :  { %v2173_v47 = vpop.f32.mrf.mxu0  ;;  %v2214_v48 = vpop.f32.mrf.mxu1 }
 0x5de   :  { %3562 = vpow2.f32 %v3235_v43  ;;  %v3236_v49 = vmul.f32 -1.442695, %v2218_v45  ;;  %v3237_v23 = vmul.f32 -1.442695, %v2220_v53  ;;  %v3474_v45 = vld [vmem:[%s4498_s4 + $0x38] sm:$0xff]   ;;  %v3612_v47 = vmov 0.0  }
 0x5df   :  { %v2174_v51 = vpop.f32.mrf.mxu0  ;;  %v2215_v52 = vpop.f32.mrf.mxu1  ;;  %v3475_v48 = vld [vmem:[%s4498_s4 + $0x30] sm:$0xff]   ;;  %v3480_v53 = vld [vmem:[%s4498_s4 + $0x8] sm:$0xff]  }
 0x5e0   :  { %3564 = vpow2.f32 %v3236_v49  ;;  %v3476_v49 = vld [vmem:[%s4498_s4 + $0x28] sm:$0xff]   ;;  %v3477_v51 = vld [vmem:[%s4498_s4 + $0x20] sm:$0xff]   ;;  %v3478_v52 = vld [vmem:[%s4498_s4 + $0x18] sm:$0xff]  }
 0x5e1   :  { %3566 = vtanh.f32 %v2219_v55 }
 0x5e2   :  { %3568 = vpow2.f32 %v3237_v23 }
 0x5eb   :  { %v3563_v25 = vpop.eup %3562 }
 0x5ec   :  { %v2224_v24 = vadd.f32 1.0, %v3563_v25  ;;  %v4540_v25 = vld [vmem:[#allocation22_spill] sm:$0xff] }
 0x5ed   :  { %v3565_v27 = vpop.eup %3564 }
 0x5ee   :  { %3570 = vrcp.f32 %v2224_v24  ;;  %v2230_v29 = vadd.f32 1.0, %v3565_v27  ;;  %v3567_v30 = vpop.eup %3566 }
 0x5ef   :  { %v3569_v50 = vpop.eup %3568 }
 0x5f0   :  { %3572 = vrcp.f32 %v2230_v29  ;;  %v2237_v35 = vadd.f32 1.0, %v3569_v50 }
 0x5f2   :  { %3574 = vrcp.f32 %v2237_v35 }
 0x5fb   :  { %v3571_v32 = vpop.eup %3570 }
 0x5fc   :  { %v2241_v31 = vmul.f32 %v3571_v32, %v3567_v30 }
 0x5fd   :  { %v3573_v34 = vpop.eup %3572 }
 0x5fe   :  { %v2240_v36 = vmul.f32 %v3573_v34, %v4374_v33 }
 0x5ff   :  { %v3575_v38 = vpop.eup %3574 }
 0x600   :  { %v4416_v26 = vadd.f32 %v2241_v31, %v2240_v36 }
 0x602   :  { %3576 = vtanh.f32 %v4416_v26 }
 0x60f   :  { %v3577_v39 = vpop.eup %3576 }
 0x610   :  { %v2244_v40 = vmul.f32 %v3577_v39, %v3575_v38  ;;  %v4541_v38 = vld [vmem:[#allocation23_spill] sm:$0xff] }
 0x612   :  { %v2256_v41 = vpack.c.bf16 %v2244_v40, %v2244_v40 }
 0x614   :  { %2482 = vmatmul.mubr.bf16.vlgmr.msra.gmra.mxu0 %v2256_v41  ;;  %2523 = vmatmul.mubr.bf16.vlgmr.msra.gmra.mxu1 %v2256_v41 }
 0x615   :  { %2764 = vmatpush1.bf16.msra.mxu0 %v4146_v0  ;;  %2805 = vmatpush1.bf16.msra.mxu1 %v4151_v7  ;;  %v4536_v7 = vld [vmem:[#allocation18_spill] sm:$0xff] }
 0x616   :  { %2765 = vmatprep.subr.bf16.mxu0 %v4160_v37  ;;  %2806 = vmatprep.subr.bf16.mxu1 %v4165_v54 }
 0x617   :  { %2795 = vmatprep.mubr.bf16.mxu0 %v4522_v57  ;;  %2836 = vmatprep.mubr.bf16.mxu1 %v4522_v57 }
 0x619   :  { %2766 = vmatpush1.bf16.msra.mxu0 %v4170_v58  ;;  %2807 = vmatpush1.bf16.msra.mxu1 %v4175_v5 }
 0x61a   :  { %2767 = vmatprep.subr.bf16.mxu0 %v4184_v19  ;;  %2808 = vmatprep.subr.bf16.mxu1 %v4189_v63  ;;  %v4537_v19 = vld [vmem:[#allocation20_spill] sm:$0xff] }
 0x61d   :  { %2768 = vmatpush1.bf16.msra.mxu0 %v4194_v17  ;;  %2809 = vmatpush1.bf16.msra.mxu1 %v4199_v18 }
 0x61e   :  { %2769 = vmatprep.subr.bf16.mxu0 %v4208_v56  ;;  %2810 = vmatprep.subr.bf16.mxu1 %v4213_v11 }
 0x621   :  { %2770 = vmatpush1.bf16.msra.mxu0 %v4218_v6  ;;  %2811 = vmatpush1.bf16.msra.mxu1 %v4223_v8  ;;  %v4538_v8 = vld [vmem:[#allocation21_spill] sm:$0xff] }
 0x622   :  { %2771 = vmatprep.subr.bf16.mxu0 %v4230_v2  ;;  %2812 = vmatprep.subr.bf16.mxu1 %v4235_v12  ;;  %v4539_v12 = vld [vmem:[#allocation19_spill] sm:$0xff] }
 0x625   :  { %2772 = vmatpush1.bf16.msra.mxu0 %v4242_v4  ;;  %2813 = vmatpush1.bf16.msra.mxu1 %v4247_v1 }
 0x626   :  { %2773 = vmatprep.subr.bf16.mxu0 %v4254_v61  ;;  %2814 = vmatprep.subr.bf16.mxu1 %v4259_v62 }
 0x629   :  { %2774 = vmatpush1.bf16.msra.mxu0 %v4266_v59  ;;  %2815 = vmatpush1.bf16.msra.mxu1 %v4271_v60 }
 0x62a   :  { %2775 = vmatprep.subr.bf16.mxu0 %v4278_v13  ;;  %2816 = vmatprep.subr.bf16.mxu1 %v4283_v9 }
 0x62d   :  { %2776 = vmatpush1.bf16.msra.mxu0 %v4290_v3  ;;  %2817 = vmatpush1.bf16.msra.mxu1 %v4295_v10 }
 0x62e   :  { %2777 = vmatprep.subr.bf16.mxu0 %v4302_v14  ;;  %2818 = vmatprep.subr.bf16.mxu1 %v4307_v20 }
 0x631   :  { %2778 = vmatpush1.bf16.msra.mxu0 %v4314_v21  ;;  %2819 = vmatpush1.bf16.msra.mxu1 %v4319_v22 }
 0x632   :  { %3326 = vmatprep.subr.bf16.mxu0 %v3612_v47 }
 0x6d4   :  { %v2483_v57 = vpop.f32.mrf.mxu0  ;;  %v2524_v0 = vpop.f32.mrf.mxu1 }
 0x6d5   :  { %v2531_v37 = vadd.f32 %v2483_v57, %v4536_v7  ;;  %v2533_v4 = vadd.f32 %v2524_v0, %v4539_v12 }
 0x6d6   :  { %v2485_v54 = vpop.f32.mrf.mxu0  ;;  %v2526_v58 = vpop.f32.mrf.mxu1 }
 0x6d7   :  { %v3270_v5 = vmul.f32 -1.442695, %v2531_v37  ;;  %v2532_v63 = vadd.f32 %v2485_v54, %v4537_v19  ;;  %v2534_v2 = vadd.f32 %v2526_v58, %v4538_v8 }
 0x6d8   :  { %v2487_v17 = vpop.f32.mrf.mxu0  ;;  %v2528_v18 = vpop.f32.mrf.mxu1 }
 0x6d9   :  { %3578 = vpow2.f32 %v3270_v5  ;;  %v3271_v56 = vmul.f32 -1.442695, %v2532_v63  ;;  %v3272_v1 = vmul.f32 -1.442695, %v2534_v2 }
 0x6da   :  { %v2488_v11 = vpop.f32.mrf.mxu0  ;;  %v2529_v6 = vpop.f32.mrf.mxu1 }
 0x6db   :  { %3580 = vpow2.f32 %v3271_v56  ;;  %v3308_v6 = vld [vmem:[%s4499_s5] ss:$0 sm:$0xff] }
 0x6dc   :  { %3582 = vtanh.f32 %v2533_v4 }
 0x6dd   :  { %3584 = vpow2.f32 %v3272_v1 }
 0x6e6   :  { %v3579_v61 = vpop.eup %3578 }
 0x6e7   :  { %v2538_v62 = vadd.f32 1.0, %v3579_v61 }
 0x6e8   :  { %v3581_v59 = vpop.eup %3580 }
 0x6e9   :  { %3586 = vrcp.f32 %v2538_v62  ;;  %v2544_v60 = vadd.f32 1.0, %v3581_v59  ;;  %v3583_v13 = vpop.eup %3582 }
 0x6ea   :  { %v3585_v9 = vpop.eup %3584 }
 0x6eb   :  { %3588 = vrcp.f32 %v2544_v60  ;;  %v2551_v20 = vadd.f32 1.0, %v3585_v9 }
 0x6ed   :  { %3590 = vrcp.f32 %v2551_v20 }
 0x6f6   :  { %v3587_v3 = vpop.eup %3586 }
 0x6f7   :  { %v2555_v10 = vmul.f32 %v3587_v3, %v3583_v13 }
 0x6f8   :  { %v3589_v14 = vpop.eup %3588 }
 0x6f9   :  { %v2554_v21 = vmul.f32 %v3589_v14, %v4416_v26 }
 0x6fa   :  { %v3591_v33 = vpop.eup %3590 }
 0x6fb   :  { %v4456_v22 = vadd.f32 %v2555_v10, %v2554_v21 }
 0x6fd   :  { %3592 = vtanh.f32 %v4456_v22 }
 0x70a   :  { %v3593_v42 = vpop.eup %3592 }
 0x70b   :  { %v2558_v43 = vmul.f32 %v3593_v42, %v3591_v33 }
 0x70d   :  { %v2570_v44 = vpack.c.bf16 %v2558_v43, %v2558_v43 }
 0x70f   :  { %2796 = vmatmul.mubr.bf16.vlgmr.msra.gmra.mxu0 %v2570_v44  ;;  %2837 = vmatmul.mubr.bf16.vlgmr.msra.gmra.mxu1 %v2570_v44 }
 0x710   :  { %3327 = vmatpush3.bf16.msra.mxu0 %v3474_v45  ;;  %3342 = vmatprep.mubr.msk.bf16.mxu0 %vm3613_vm1, %v3612_v47 }
 0x711   :  { %3328 = vmatprep.subr.bf16.mxu0 %v3612_v47 }
 0x714   :  { %3329 = vmatpush3.bf16.msra.mxu0 %v3475_v48 }
 0x715   :  { %3330 = vmatprep.subr.bf16.mxu0 %v3612_v47 }
 0x718   :  { %3331 = vmatpush3.bf16.msra.mxu0 %v3476_v49 }
 0x719   :  { %3332 = vmatprep.subr.bf16.mxu0 %v3612_v47 }
 0x71c   :  { %3333 = vmatpush3.bf16.msra.mxu0 %v3477_v51 }
 0x71d   :  { %3334 = vmatprep.subr.bf16.mxu0 %v3612_v47 }
 0x720   :  { %3335 = vmatpush3.bf16.msra.mxu0 %v3478_v52 }
 0x721   :  { %3336 = vmatprep.subr.bf16.mxu0 %v3612_v47 }
 0x724   :  { %3337 = vmatpush3.bf16.msra.mxu0 %v3479_v16 }
 0x725   :  { %3338 = vmatprep.subr.bf16.mxu0 %v3612_v47 }
 0x728   :  { %3339 = vmatpush3.bf16.msra.mxu0 %v3480_v53 }
 0x729   :  { %3340 = vmatprep.subr.bf16.mxu0 %v3612_v47 }
 0x72c   :  { %3341 = vmatpush3.bf16.msra.mxu0 %v3481_v46 }
 0x7cf   :  { %v2797_v55 = vpop.f32.mrf.mxu0  ;;  %v2838_v23 = vpop.f32.mrf.mxu1 }
 0x7d0   :  { %v2845_v24 = vadd.f32 %v2797_v55, %v4540_v25  ;;  %v2847_v39 = vadd.f32 %v2838_v23, %v4541_v38 }
 0x7d1   :  { %v2799_v27 = vpop.f32.mrf.mxu0  ;;  %v2840_v29 = vpop.f32.mrf.mxu1 }
 0x7d2   :  { %v3305_v30 = vmul.f32 -1.442695, %v2845_v24  ;;  %v2846_v50 = vadd.f32 %v2799_v27, %v4036_v15  ;;  %v2848_v26 = vadd.f32 %v2840_v29, %v4039_v28 }
 0x7d3   :  { %v2801_v32 = vpop.f32.mrf.mxu0  ;;  %v2842_v31 = vpop.f32.mrf.mxu1 }
 0x7d4   :  { %3594 = vpow2.f32 %v3305_v30  ;;  %v3306_v34 = vmul.f32 -1.442695, %v2846_v50  ;;  %v3307_v40 = vmul.f32 -1.442695, %v2848_v26 }
 0x7d5   :  { %v2802_v35 = vpop.f32.mrf.mxu0  ;;  %v2843_v36 = vpop.f32.mrf.mxu1 }
 0x7d6   :  { %3596 = vpow2.f32 %v3306_v34 }
 0x7d7   :  { %3598 = vtanh.f32 %v2847_v39 }
 0x7d8   :  { %3600 = vpow2.f32 %v3307_v40 }
 0x7e1   :  { %v3595_v41 = vpop.eup %3594 }
 0x7e2   :  { %v2852_v57 = vadd.f32 1.0, %v3595_v41 }
 0x7e3   :  { %v3597_v0 = vpop.eup %3596 }
 0x7e4   :  { %3602 = vrcp.f32 %v2852_v57  ;;  %v2858_v7 = vadd.f32 1.0, %v3597_v0  ;;  %v3599_v15 = vpop.eup %3598 }
 0x7e5   :  { %v3601_v37 = vpop.eup %3600 }
 0x7e6   :  { %3604 = vrcp.f32 %v2858_v7  ;;  %v2865_v19 = vadd.f32 1.0, %v3601_v37 }
 0x7e8   :  { %3606 = vrcp.f32 %v2865_v19 }
 0x7f1   :  { %v3603_v54 = vpop.eup %3602 }
 0x7f2   :  { %v2869_v58 = vmul.f32 %v3603_v54, %v3599_v15 }
 0x7f3   :  { %v3605_v5 = vpop.eup %3604 }
 0x7f4   :  { %v2868_v63 = vmul.f32 %v3605_v5, %v4456_v22 }
 0x7f5   :  { %v3607_v17 = vpop.eup %3606 }
 0x7f6   :  { %v2870_v28 = vadd.f32 %v2869_v58, %v2868_v63 }
 0x7f8   :  { %3608 = vtanh.f32 %v2870_v28 }
 0x805   :  { %v3609_v18 = vpop.eup %3608 }
 0x806   :  { %v2872_v56 = vmul.f32 %v3609_v18, %v3607_v17 }
 0x808   :  { %v2876_v11 = vpack.c.bf16 %v2872_v56, %v2872_v56 }
 0x80a   :  { %3343 = vmatmul.mubr.bf16.vlgmr.msra.gmra.mxu0 %v2876_v11 }
 0x8ca   :  { %v2982_v8 = vpop.f32.mrf.mxu0 }
 0x8cb   :  { %v2983_v2 = vadd.f32 %v3308_v6, %v2982_v8 }
 0x8cc   :  { %v3344_v12 = vpop.f32.mrf.mxu0 }
 0x8cd   :  { %2988 = vst [vmem:[%s4500_s6] sm:$0xff] %v2983_v2 }
 0x8ce   :  { %v2985_v4 = vpop.f32.mrf.mxu0 }
 0x8d0   :  { %v3345_v1 = vpop.f32.mrf.mxu0 }

</bundles_post_ra>
